<compile_context>
chip_gen: v5e
topology: v5e:2x2
jax: 0.10.0
libtpu: 0.0.40
codegen_flags: <defaults>
</compile_context>

<pallas_src>
import functools

import jax
import jax.numpy as jnp
from jax.experimental import pallas as pl
from jax.experimental.pallas import tpu as pltpu


def _router_kernel(td_ref, tc_ref, qh_ref,
                   wf_ref, bf_ref, w1d_ref, w1c_ref, w2d_ref, b2d_ref,
                   mix_ref, wts_ref, *, matmul_dtype):
    f32 = jnp.float32
    td = td_ref[0].astype(matmul_dtype)          # (TP, D)
    tc = tc_ref[0].astype(matmul_dtype)          # (TP, D)
    wf = wf_ref[...]                             # (D, D)  matmul_dtype
    bf = bf_ref[...]                             # (1, D)  f32

    # flow_transform on both token streams (shared weights).  Two separate
    # matmuls: same MXU cycles as a fused one, no concat/slice VMEM copies.
    tdp = jnp.dot(td, wf, preferred_element_type=f32) + bf     # (TP, D) f32
    tcp = jnp.dot(tc, wf, preferred_element_type=f32) + bf     # (TP, D) f32

    # router_mlp layer 1: concat([tdp, tcp, tq]) @ W1 + b1, decomposed.
    # The text-query term (with b1 folded in) is precomputed in the wrapper.
    h = (jnp.dot(tdp.astype(matmul_dtype), w1d_ref[...], preferred_element_type=f32)
         + jnp.dot(tcp.astype(matmul_dtype), w1c_ref[...], preferred_element_type=f32)
         + qh_ref[0])                                           # (TP, H) f32

    # exact GELU (erf-based, PyTorch nn.GELU default)
    h = 0.5 * h * (1.0 + jax.lax.erf(h * 0.7071067811865476))

    w2d = w2d_ref[...]                           # (1, H) f32
    b2d = b2d_ref[...]                           # (1, 1) f32

    # 2-class softmax == sigmoid of the logit difference.
    # Column form (per-row scalar, broadcast over D) for the mix:
    # VALU mul + XLU cross-lane reduce + EUP sigmoid (MXU/store slots stay free).
    d_col = jnp.sum(h * w2d, axis=-1, keepdims=True) + b2d      # (TP, 1)
    w_cont_col = jax.nn.sigmoid(d_col)
    mix_ref[0] = ((1.0 - w_cont_col) * tdp + w_cont_col * tcp).astype(mix_ref.dtype)

    # Lane-dense row form for the weights output: a tiny (1,H) x (TP,H)^T MXU
    # contraction yields (1, TP) directly — no sublane->lane relayout and no
    # masked narrow store.  The 2-column weights tensor is built in the wrapper.
    d_row = jax.lax.dot_general(w2d, h, (((1,), (1,)), ((), ())),
                                preferred_element_type=f32) + b2d   # (1, TP)
    wts_ref[0] = jax.nn.sigmoid(d_row).astype(wts_ref.dtype)


def _round_up(x, m):
    return ((x + m - 1) // m) * m


def _plan_row_tile(rows, vmem_need, cap_bytes):
    """Pick the row tile TP: multiple of 8; multiple of 128 whenever rows are
    split across several tiles (keeps the lane-major weights block aligned)."""
    if rows <= 1024:
        tp = _round_up(rows, 8)
        if vmem_need(tp) <= cap_bytes:
            return tp
    for tp in (512, 384, 256, 128):     # 512 ~ measured HBM-roofline knee
        if vmem_need(tp) <= cap_bytes:
            return tp
    return 128


def multi_scale_flow_router(token_discrete, token_continuous, text_query, params,
                            *, matmul_dtype=jnp.float32, vmem_cap_bytes=None):
    """Pallas implementation of MultiScaleFlowRouter.forward.

    Args:
      token_discrete:   (B, pn, token_dim)
      token_continuous: (B, pn, token_dim)
      text_query:       (B, query_dim)
      params:           dict of weights (see init_params)
      matmul_dtype:     dtype fed to the MXU (jnp.bfloat16 recommended on
                        v6e/v7x); accumulation and VPU/EUP math stay float32.
      vmem_cap_bytes:   VMEM budget cap; default 3/4 of queried VMEM capacity
                        (48 MiB fallback, which is v7x-safe).

    Returns:
      mix_tokens: (B, pn, token_dim) float32
      weights:    (B, pn, 2)         float32
    """
    B, pn, D = token_discrete.shape
    H = params["b1"].shape[-1]
    f32 = jnp.float32
    mm_dt = jnp.dtype(matmul_dtype)

    if vmem_cap_bytes is None:
        try:
            vmem_cap_bytes = (int(pltpu.get_tpu_info().vmem_capacity_bytes) * 3) // 4
        except Exception:
            vmem_cap_bytes = 48 << 20            # v7x has 64 MiB/TC -> stay under
    vmem_cap_bytes = max(int(vmem_cap_bytes), 24 << 20)

    # Flatten (B, pn) to one row axis when pn is small so per-grid-step
    # overhead (~0.35us) amortizes over one large tile; the per-row query
    # contribution is then pre-broadcast in the wrapper.
    flatten = (B > 1) and (pn < 128)
    rows = B * pn if flatten else pn
    B_grid = 1 if flatten else B

    in_bytes = jnp.dtype(token_discrete.dtype).itemsize
    w_bytes = mm_dt.itemsize
    # Resident weights; x2 in case the single-buffer request is not honoured.
    weight_bytes = 2 * ((D * D + 2 * D * H) * w_bytes + (D + 2 * H + 1) * 4)

    def vmem_need(tp):
        qh_stream = 2 * (tp * H * 4 if flatten else H * 4)
        streams = 2 * (2 * tp * D * in_bytes      # td, tc tiles (double-buffered)
                       + tp * D * 4 + tp * 4)     # mix, w_cont tiles
        temps = (2 * tp * D * w_bytes             # matmul-dtype activation copies
                 + 3 * tp * D * 4                 # tdp, tcp, mix temp
                 + tp * H * 4 + 4 * tp * 4)       # h + per-row scalars
        return streams + qh_stream + temps + weight_bytes

    TP = _plan_row_tile(rows, vmem_need, vmem_cap_bytes - (8 << 20))
    rows_pad = _round_up(rows, TP)
    n_tiles = rows_pad // TP

    # Per-batch query contribution to router_mlp layer 1 (b1 folded in):
    # removes the (N, query_dim) broadcast stream and one MXU matmul per tile.
    qh = (text_query.astype(f32) @ params["w1q"].astype(f32)
          + params["b1"].astype(f32))                            # (B, H)

    if flatten:
        td_in = token_discrete.reshape(1, rows, D)
        tc_in = token_continuous.reshape(1, rows, D)
        qh_in = jnp.broadcast_to(qh[:, None, :], (B, pn, H)).reshape(1, rows, H)
        qh_spec = pl.BlockSpec((1, TP, H), lambda b, t: (b, t, 0))
    else:
        td_in, tc_in = token_discrete, token_continuous
        qh_in = qh.reshape(B, 1, H)
        qh_spec = pl.BlockSpec((1, 1, H), lambda b, t: (b, 0, 0))

    if rows_pad != rows:   # pad rows; the padded tail is sliced off below
        pad = ((0, 0), (0, rows_pad - rows), (0, 0))
        td_in = jnp.pad(td_in, pad)
        tc_in = jnp.pad(tc_in, pad)
        if flatten:
            qh_in = jnp.pad(qh_in, pad)

    # Logit-difference form of the 2-class softmax head.
    w2 = params["w2"].astype(f32)
    b2 = params["b2"].astype(f32)
    w2d = (w2[:, 1] - w2[:, 0]).reshape(1, H)
    b2d = (b2[:, 1] - b2[:, 0]).reshape(1, 1)

    wf = params["wf"].astype(mm_dt)
    w1d = params["w1d"].astype(mm_dt)
    w1c = params["w1c"].astype(mm_dt)
    bf = params["bf"].astype(f32)

    Ntot = B_grid * rows_pad
    flops = int(4 * Ntot * D * D + 4 * Ntot * D * H + 8 * Ntot * H + 6 * Ntot * D)
    transcendentals = int(Ntot * H + 2 * Ntot)
    bytes_accessed = int(in_bytes * 2 * Ntot * D + 4 * (Ntot * D + Ntot)
                         + 4 * (Ntot * H if flatten else B * H)
                         + w_bytes * (D * D + 2 * D * H) + 4 * (D + 2 * H + 1))
    vmem_limit = int(min(vmem_cap_bytes, max(vmem_need(TP) + (8 << 20), 16 << 20)))

    row_in = pl.BlockSpec((1, TP, D), lambda b, t: (b, t, 0))

    def run(single_buffer_weights):
        def const(shape):
            if single_buffer_weights:
                # Weights never change across grid steps: single-buffer them to
                # free VMEM headroom (matters on v7x's 64 MiB/TC).
                return pl.BlockSpec(shape, lambda b, t: (0,) * len(shape),
                                    pipeline_mode=pl.Buffered(1))
            return pl.BlockSpec(shape, lambda b, t: (0,) * len(shape))

        return pl.pallas_call(
            functools.partial(_router_kernel, matmul_dtype=mm_dt),
            grid=(B_grid, n_tiles),
            in_specs=[
                row_in,                 # token_discrete tile
                row_in,                 # token_continuous tile
                qh_spec,                # query-term contribution (+ b1)
                const((D, D)),          # flow_transform weight
                const((1, D)),          # flow_transform bias
                const((D, H)),          # W1 block for discrete stream
                const((D, H)),          # W1 block for continuous stream
                const((1, H)),          # w2[:,1] - w2[:,0]
                const((1, 1)),          # b2[1]  - b2[0]
            ],
            out_specs=[
                pl.BlockSpec((1, TP, D), lambda b, t: (b, t, 0)),   # mix
                pl.BlockSpec((1, 1, TP), lambda b, t: (b, 0, t)),   # w_cont (lane-dense)
            ],
            out_shape=[
                jax.ShapeDtypeStruct((B_grid, rows_pad, D), f32),
                jax.ShapeDtypeStruct((B_grid, 1, rows_pad), f32),
            ],
            compiler_params=pltpu.CompilerParams(
                dimension_semantics=("parallel", "parallel"),
                vmem_limit_bytes=vmem_limit),
            cost_estimate=pl.CostEstimate(flops=flops,
                                          transcendentals=transcendentals,
                                          bytes_accessed=bytes_accessed),
        )(td_in, tc_in, qh_in, wf, bf, w1d, w1c, w2d, b2d)

    try:
        mix_pad, wcont_pad = run(single_buffer_weights=True)
    except Exception:
        # pipeline_mode / pl.Buffered(1) unsupported on this jax version:
        # fall back to default double-buffered constant blocks.
        mix_pad, wcont_pad = run(single_buffer_weights=False)

    mix = mix_pad[:, :rows, :]
    w_cont = wcont_pad[:, 0, :rows]
    if flatten:
        mix = mix.reshape(B, pn, D)
        w_cont = w_cont.reshape(B, pn)
    weights = jnp.stack([1.0 - w_cont, w_cont], axis=-1)     # (B, pn, 2)
    return mix, weights


def init_params(key, token_dim, query_dim, hidden_dim):
    """Deterministic synthetic parameter init (torch-style uniform fan-in)."""
    ks = jax.random.split(key, 6)

    def lin(k, fan_in, fan_out):
        bound = 1.0 / jnp.sqrt(jnp.float32(fan_in))
        kw, kb = jax.random.split(k)
        w = jax.random.uniform(kw, (fan_in, fan_out), jnp.float32, -bound, bound)
        b = jax.random.uniform(kb, (1, fan_out), jnp.float32, -bound, bound)
        return w, b

    # flow_transform: Linear(token_dim, token_dim)
    wf, bf = lin(ks[0], token_dim, token_dim)

    # router_mlp[0]: Linear(2*token_dim + query_dim, hidden_dim), split by input block
    in_dim = 2 * token_dim + query_dim
    bound1 = 1.0 / jnp.sqrt(jnp.float32(in_dim))
    w1 = jax.random.uniform(ks[1], (in_dim, hidden_dim), jnp.float32, -bound1, bound1)
    b1 = jax.random.uniform(ks[2], (1, hidden_dim), jnp.float32, -bound1, bound1)
    w1d = w1[:token_dim]
    w1c = w1[token_dim:2 * token_dim]
    w1q = w1[2 * token_dim:]

    # router_mlp[2]: Linear(hidden_dim, 2)
    w2, b2 = lin(ks[3], hidden_dim, 2)

    return dict(wf=wf, bf=bf, w1d=w1d, w1c=w1c, w1q=w1q, b1=b1, w2=w2, b2=b2)


def _reference(td, tc, tq, p):
    """Pure-JAX reference mirroring the PyTorch forward."""
    tdp = td @ p["wf"] + p["bf"][0]
    tcp = tc @ p["wf"] + p["bf"][0]
    B, pn, _ = td.shape
    tqe = jnp.broadcast_to(tq[:, None, :], (B, pn, tq.shape[-1]))
    x = jnp.concatenate([tdp, tcp, tqe], axis=-1)
    w1 = jnp.concatenate([p["w1d"], p["w1c"], p["w1q"]], axis=0)
    h = x @ w1 + p["b1"][0]
    h = 0.5 * h * (1.0 + jax.lax.erf(h / jnp.sqrt(2.0)))
    logits = h @ p["w2"] + p["b2"][0]
    w = jax.nn.softmax(logits, axis=-1)
    mix = w[..., 0:1] * tdp + w[..., 1:2] * tcp
    return mix, w


if __name__ == "__main__":
    base_key = jax.random.PRNGKey(0)
    key1, key2 = jax.random.split(base_key)

    def make_case(key, B, pn, token_dim, query_dim, hidden_dim):
        k_td, k_tc, k_tq, k_par = jax.random.split(key, 4)
        td = jax.random.normal(k_td, (B, pn, token_dim), jnp.float32)
        tc = jax.random.normal(k_tc, (B, pn, token_dim), jnp.float32)
        tq = jax.random.normal(k_tq, (B, query_dim), jnp.float32)
        params = init_params(k_par, token_dim, query_dim, hidden_dim)
        return td, tc, tq, params

    # Case 1: module-sized demo (small pn -> flattened single-tile path).
    td, tc, tq, params = make_case(key1, B=2, pn=8,
                                   token_dim=32, query_dim=16, hidden_dim=32)
    mix, wts = multi_scale_flow_router(td, tc, tq, params)
    jax.block_until_ready((mix, wts))
    mix_r, wts_r = _reference(td, tc, tq, params)
    assert mix.shape == (2, 8, 32) and wts.shape == (2, 8, 2)
    assert jnp.allclose(mix, mix_r, atol=1e-4, rtol=1e-4)
    assert jnp.allclose(wts, wts_r, atol=1e-5, rtol=1e-4)

    # Case 1b: bf16 MXU path (recommended on v6e/v7x) — looser tolerances.
    mix_bf, wts_bf = multi_scale_flow_router(td, tc, tq, params,
                                             matmul_dtype=jnp.bfloat16)
    jax.block_until_ready((mix_bf, wts_bf))
    assert jnp.allclose(mix_bf, mix_r, atol=5e-2, rtol=5e-2)
    assert jnp.allclose(wts_bf, wts_r, atol=5e-2, rtol=5e-2)

    # Case 2: large pn that is not a multiple of the row tile
    # (exercises multi-tile grid + wrapper-side row padding/slicing).
    td2, tc2, tq2, params2 = make_case(key2, B=1, pn=1300,
                                       token_dim=32, query_dim=16, hidden_dim=32)
    mix2, wts2 = multi_scale_flow_router(td2, tc2, tq2, params2)
    jax.block_until_ready((mix2, wts2))
    mix2_r, wts2_r = _reference(td2, tc2, tq2, params2)
    assert mix2.shape == (1, 1300, 32) and wts2.shape == (1, 1300, 2)
    assert jnp.allclose(mix2, mix2_r, atol=1e-4, rtol=1e-4)
    assert jnp.allclose(wts2, wts2_r, atol=1e-5, rtol=1e-4)

    print("KERNEL_OK")
</pallas_src>

<mosaic_0001>
module attributes {stable_mosaic.version = 11 : i64} {
  func.func @_router_kernel(%arg0: i32, %arg1: i32, %arg2: memref<1x16x32xf32, #tpu.memory_space<vmem>>, %arg3: memref<1x16x32xf32, #tpu.memory_space<vmem>>, %arg4: memref<1x16x32xf32, #tpu.memory_space<vmem>>, %arg5: memref<32x32xf32, #tpu.memory_space<vmem>>, %arg6: memref<1x32xf32, #tpu.memory_space<vmem>>, %arg7: memref<32x32xf32, #tpu.memory_space<vmem>>, %arg8: memref<32x32xf32, #tpu.memory_space<vmem>>, %arg9: memref<1x32xf32, #tpu.memory_space<vmem>>, %arg10: memref<1x1xf32, #tpu.memory_space<vmem>>, %arg11: memref<1x16x32xf32, #tpu.memory_space<vmem>>, %arg12: memref<1x1x16xf32, #tpu.memory_space<vmem>>) attributes {dimension_semantics = [#tpu.dimension_semantics<parallel>, #tpu.dimension_semantics<parallel>], iteration_bounds = array<i64: 1, 1>, scalar_prefetch = 0 : i64, scratch_operands = 0 : i64, tpu.core_type = #tpu.core_type<tc>, window_params = [{transform_indices = @transform_0, window_bounds = array<i64: 1, 16, 32>}, {transform_indices = @transform_1, window_bounds = array<i64: 1, 16, 32>}, {transform_indices = @transform_2, window_bounds = array<i64: 1, 16, 32>}, {pipeline_mode = #tpu.pipeline_mode<synchronous>, transform_indices = @transform_3, window_bounds = array<i64: 32, 32>}, {pipeline_mode = #tpu.pipeline_mode<synchronous>, transform_indices = @transform_4, window_bounds = array<i64: 1, 32>}, {pipeline_mode = #tpu.pipeline_mode<synchronous>, transform_indices = @transform_5, window_bounds = array<i64: 32, 32>}, {pipeline_mode = #tpu.pipeline_mode<synchronous>, transform_indices = @transform_6, window_bounds = array<i64: 32, 32>}, {pipeline_mode = #tpu.pipeline_mode<synchronous>, transform_indices = @transform_7, window_bounds = array<i64: 1, 32>}, {pipeline_mode = #tpu.pipeline_mode<synchronous>, transform_indices = @transform_8, window_bounds = array<i64: 1, 1>}, {transform_indices = @transform_9, window_bounds = array<i64: 1, 16, 32>}, {transform_indices = @transform_10, window_bounds = array<i64: 1, 1, 16>}]} {
    %c0 = arith.constant 0 : index
    %c0_0 = arith.constant 0 : index
    %c0_1 = arith.constant 0 : index
    %0 = vector.load %arg2[%c0, %c0_0, %c0_1] : memref<1x16x32xf32, #tpu.memory_space<vmem>>, vector<1x16x32xf32>
    %1 = vector.shape_cast %0 : vector<1x16x32xf32> to vector<16x32xf32>
    %c0_2 = arith.constant 0 : index
    %c0_3 = arith.constant 0 : index
    %c0_4 = arith.constant 0 : index
    %2 = vector.load %arg3[%c0_2, %c0_3, %c0_4] : memref<1x16x32xf32, #tpu.memory_space<vmem>>, vector<1x16x32xf32>
    %3 = vector.shape_cast %2 : vector<1x16x32xf32> to vector<16x32xf32>
    %c0_5 = arith.constant 0 : index
    %c0_6 = arith.constant 0 : index
    %4 = vector.load %arg5[%c0_5, %c0_6] : memref<32x32xf32, #tpu.memory_space<vmem>>, vector<32x32xf32>
    %c0_7 = arith.constant 0 : index
    %c0_8 = arith.constant 0 : index
    %5 = vector.load %arg6[%c0_7, %c0_8] : memref<1x32xf32, #tpu.memory_space<vmem>>, vector<1x32xf32>
    %cst = arith.constant dense<0.000000e+00> : vector<16x32xf32>
    %6 = tpu.matmul %1, %4, %cst {dimension_numbers = #tpu.dot_dimension_numbers<[1], [0], [0], [1], [0, 0, 1, 1], [], []>} : vector<16x32xf32>, vector<32x32xf32>, vector<16x32xf32> -> vector<16x32xf32>
    %7 = vector.broadcast %5 : vector<1x32xf32> to vector<16x32xf32>
    %8 = arith.addf %6, %7 : vector<16x32xf32>
    %cst_9 = arith.constant dense<0.000000e+00> : vector<16x32xf32>
    %9 = tpu.matmul %3, %4, %cst_9 {dimension_numbers = #tpu.dot_dimension_numbers<[1], [0], [0], [1], [0, 0, 1, 1], [], []>} : vector<16x32xf32>, vector<32x32xf32>, vector<16x32xf32> -> vector<16x32xf32>
    %10 = vector.broadcast %5 : vector<1x32xf32> to vector<16x32xf32>
    %11 = arith.addf %9, %10 : vector<16x32xf32>
    %c0_10 = arith.constant 0 : index
    %c0_11 = arith.constant 0 : index
    %12 = vector.load %arg7[%c0_10, %c0_11] : memref<32x32xf32, #tpu.memory_space<vmem>>, vector<32x32xf32>
    %cst_12 = arith.constant dense<0.000000e+00> : vector<16x32xf32>
    %13 = tpu.matmul %8, %12, %cst_12 {dimension_numbers = #tpu.dot_dimension_numbers<[1], [0], [0], [1], [0, 0, 1, 1], [], []>} : vector<16x32xf32>, vector<32x32xf32>, vector<16x32xf32> -> vector<16x32xf32>
    %c0_13 = arith.constant 0 : index
    %c0_14 = arith.constant 0 : index
    %14 = vector.load %arg8[%c0_13, %c0_14] : memref<32x32xf32, #tpu.memory_space<vmem>>, vector<32x32xf32>
    %cst_15 = arith.constant dense<0.000000e+00> : vector<16x32xf32>
    %15 = tpu.matmul %11, %14, %cst_15 {dimension_numbers = #tpu.dot_dimension_numbers<[1], [0], [0], [1], [0, 0, 1, 1], [], []>} : vector<16x32xf32>, vector<32x32xf32>, vector<16x32xf32> -> vector<16x32xf32>
    %16 = arith.addf %13, %15 : vector<16x32xf32>
    %c0_16 = arith.constant 0 : index
    %c0_17 = arith.constant 0 : index
    %c0_18 = arith.constant 0 : index
    %17 = vector.load %arg4[%c0_16, %c0_17, %c0_18] : memref<1x16x32xf32, #tpu.memory_space<vmem>>, vector<1x16x32xf32>
    %18 = vector.shape_cast %17 : vector<1x16x32xf32> to vector<16x32xf32>
    %19 = arith.addf %16, %18 : vector<16x32xf32>
    %cst_19 = arith.constant 5.000000e-01 : f32
    %20 = vector.broadcast %cst_19 : f32 to vector<16x32xf32>
    %21 = arith.mulf %20, %19 : vector<16x32xf32>
    %cst_20 = arith.constant 0.707106769 : f32
    %22 = vector.broadcast %cst_20 : f32 to vector<16x32xf32>
    %23 = arith.mulf %19, %22 : vector<16x32xf32>
    %24 = math.erf %23 : vector<16x32xf32>
    %cst_21 = arith.constant 1.000000e+00 : f32
    %25 = vector.broadcast %cst_21 : f32 to vector<16x32xf32>
    %26 = arith.addf %25, %24 : vector<16x32xf32>
    %27 = arith.mulf %21, %26 : vector<16x32xf32>
    %c0_22 = arith.constant 0 : index
    %c0_23 = arith.constant 0 : index
    %28 = vector.load %arg9[%c0_22, %c0_23] : memref<1x32xf32, #tpu.memory_space<vmem>>, vector<1x32xf32>
    %c0_24 = arith.constant 0 : index
    %c0_25 = arith.constant 0 : index
    %29 = vector.load %arg10[%c0_24, %c0_25] : memref<1x1xf32, #tpu.memory_space<vmem>>, vector<1x1xf32>
    %30 = vector.broadcast %28 : vector<1x32xf32> to vector<16x32xf32>
    %31 = arith.mulf %27, %30 : vector<16x32xf32>
    %cst_26 = arith.constant dense<0.000000e+00> : vector<16xf32>
    %32 = vector.multi_reduction <add>, %31, %cst_26 [1] : vector<16x32xf32> to vector<16xf32>
    %33 = vector.shape_cast %32 : vector<16xf32> to vector<16x1xf32>
    %34 = vector.broadcast %29 : vector<1x1xf32> to vector<16x1xf32>
    %35 = arith.addf %33, %34 : vector<16x1xf32>
    %36 = arith.negf %35 : vector<16x1xf32>
    %37 = math.exp %36 : vector<16x1xf32>
    %cst_27 = arith.constant 1.000000e+00 : f32
    %38 = vector.broadcast %cst_27 : f32 to vector<16x1xf32>
    %39 = arith.addf %38, %37 : vector<16x1xf32>
    %40 = arith.divf %38, %39 : vector<16x1xf32>
    %cst_28 = arith.constant 1.000000e+00 : f32
    %41 = vector.broadcast %cst_28 : f32 to vector<16x1xf32>
    %42 = arith.subf %41, %40 : vector<16x1xf32>
    %43 = vector.broadcast %42 : vector<16x1xf32> to vector<16x32xf32>
    %44 = arith.mulf %43, %8 : vector<16x32xf32>
    %45 = vector.broadcast %40 : vector<16x1xf32> to vector<16x32xf32>
    %46 = arith.mulf %45, %11 : vector<16x32xf32>
    %47 = arith.addf %44, %46 : vector<16x32xf32>
    %c0_29 = arith.constant 0 : index
    %c0_30 = arith.constant 0 : index
    %c0_31 = arith.constant 0 : index
    %48 = vector.load %arg11[%c0_29, %c0_30, %c0_31] : memref<1x16x32xf32, #tpu.memory_space<vmem>>, vector<1x16x32xf32>
    %49 = vector.shape_cast %48 : vector<1x16x32xf32> to vector<16x32xf32>
    %50 = vector.shape_cast %47 : vector<16x32xf32> to vector<1x16x32xf32>
    tpu.vector_store %arg11[%c0_29, %c0_30, %c0_31], %50 {strides = array<i32>} : memref<1x16x32xf32, #tpu.memory_space<vmem>>, vector<1x16x32xf32>,
    %cst_32 = arith.constant dense<0.000000e+00> : vector<1x16xf32>
    %51 = tpu.matmul %28, %27, %cst_32 {dimension_numbers = #tpu.dot_dimension_numbers<[1], [1], [0], [0], [0, 0, 1, 0], [], []>} : vector<1x32xf32>, vector<16x32xf32>, vector<1x16xf32> -> vector<1x16xf32>
    %52 = vector.broadcast %29 : vector<1x1xf32> to vector<1x16xf32>
    %53 = arith.addf %51, %52 : vector<1x16xf32>
    %54 = arith.negf %53 : vector<1x16xf32>
    %55 = math.exp %54 : vector<1x16xf32>
    %cst_33 = arith.constant 1.000000e+00 : f32
    %56 = vector.broadcast %cst_33 : f32 to vector<1x16xf32>
    %57 = arith.addf %56, %55 : vector<1x16xf32>
    %58 = arith.divf %56, %57 : vector<1x16xf32>
    %c0_34 = arith.constant 0 : index
    %c0_35 = arith.constant 0 : index
    %c0_36 = arith.constant 0 : index
    %59 = vector.load %arg12[%c0_34, %c0_35, %c0_36] : memref<1x1x16xf32, #tpu.memory_space<vmem>>, vector<1x1x16xf32>
    %60 = vector.shape_cast %59 : vector<1x1x16xf32> to vector<1x16xf32>
    %61 = vector.shape_cast %58 : vector<1x16xf32> to vector<1x1x16xf32>
    tpu.vector_store %arg12[%c0_34, %c0_35, %c0_36], %61 {strides = array<i32>} : memref<1x1x16xf32, #tpu.memory_space<vmem>>, vector<1x1x16xf32>,
    return
  }
  func.func @transform_0(%arg0: i32, %arg1: i32) -> (i32, i32, i32) {
    %c0_i32 = arith.constant 0 : i32
    %c0_i32_0 = arith.constant 0 : i32
    return %arg0, %arg1, %c0_i32 : i32, i32, i32
  }
  func.func @transform_1(%arg0: i32, %arg1: i32) -> (i32, i32, i32) {
    %c0_i32 = arith.constant 0 : i32
    %c0_i32_0 = arith.constant 0 : i32
    return %arg0, %arg1, %c0_i32 : i32, i32, i32
  }
  func.func @transform_2(%arg0: i32, %arg1: i32) -> (i32, i32, i32) {
    %c0_i32 = arith.constant 0 : i32
    %c0_i32_0 = arith.constant 0 : i32
    return %arg0, %arg1, %c0_i32 : i32, i32, i32
  }
  func.func @transform_3(%arg0: i32, %arg1: i32) -> (i32, i32) {
    %c0_i32 = arith.constant 0 : i32
    %c0_i32_0 = arith.constant 0 : i32
    %c0_i32_1 = arith.constant 0 : i32
    return %c0_i32, %c0_i32_0 : i32, i32
  }
  func.func @transform_4(%arg0: i32, %arg1: i32) -> (i32, i32) {
    %c0_i32 = arith.constant 0 : i32
    %c0_i32_0 = arith.constant 0 : i32
    %c0_i32_1 = arith.constant 0 : i32
    return %c0_i32, %c0_i32_0 : i32, i32
  }
  func.func @transform_5(%arg0: i32, %arg1: i32) -> (i32, i32) {
    %c0_i32 = arith.constant 0 : i32
    %c0_i32_0 = arith.constant 0 : i32
    %c0_i32_1 = arith.constant 0 : i32
    return %c0_i32, %c0_i32_0 : i32, i32
  }
  func.func @transform_6(%arg0: i32, %arg1: i32) -> (i32, i32) {
    %c0_i32 = arith.constant 0 : i32
    %c0_i32_0 = arith.constant 0 : i32
    %c0_i32_1 = arith.constant 0 : i32
    return %c0_i32, %c0_i32_0 : i32, i32
  }
  func.func @transform_7(%arg0: i32, %arg1: i32) -> (i32, i32) {
    %c0_i32 = arith.constant 0 : i32
    %c0_i32_0 = arith.constant 0 : i32
    %c0_i32_1 = arith.constant 0 : i32
    return %c0_i32, %c0_i32_0 : i32, i32
  }
  func.func @transform_8(%arg0: i32, %arg1: i32) -> (i32, i32) {
    %c0_i32 = arith.constant 0 : i32
    %c0_i32_0 = arith.constant 0 : i32
    %c0_i32_1 = arith.constant 0 : i32
    return %c0_i32, %c0_i32_0 : i32, i32
  }
  func.func @transform_9(%arg0: i32, %arg1: i32) -> (i32, i32, i32) {
    %c0_i32 = arith.constant 0 : i32
    %c0_i32_0 = arith.constant 0 : i32
    return %arg0, %arg1, %c0_i32 : i32, i32, i32
  }
  func.func @transform_10(%arg0: i32, %arg1: i32) -> (i32, i32, i32) {
    %c0_i32 = arith.constant 0 : i32
    %c0_i32_0 = arith.constant 0 : i32
    return %arg0, %c0_i32, %arg1 : i32, i32, i32
  }
}

module attributes {stable_mosaic.version = 11 : i64} {
  func.func @_router_kernel(%arg0: i32, %arg1: i32, %arg2: memref<1x16x32xf32, #tpu.memory_space<vmem>>, %arg3: memref<1x16x32xf32, #tpu.memory_space<vmem>>, %arg4: memref<1x16x32xf32, #tpu.memory_space<vmem>>, %arg5: memref<32x32xf32, #tpu.memory_space<vmem>>, %arg6: memref<1x32xf32, #tpu.memory_space<vmem>>, %arg7: memref<32x32xf32, #tpu.memory_space<vmem>>, %arg8: memref<32x32xf32, #tpu.memory_space<vmem>>, %arg9: memref<1x32xf32, #tpu.memory_space<vmem>>, %arg10: memref<1x1xf32, #tpu.memory_space<vmem>>, %arg11: memref<1x16x32xf32, #tpu.memory_space<vmem>>, %arg12: memref<1x1x16xf32, #tpu.memory_space<vmem>>) attributes {dimension_semantics = [#tpu.dimension_semantics<parallel>, #tpu.dimension_semantics<parallel>], iteration_bounds = array<i64: 1, 1>, scalar_prefetch = 0 : i64, scratch_operands = 0 : i64, tpu.core_type = #tpu.core_type<tc>, window_params = [{transform_indices = @transform_0, window_bounds = array<i64: 1, 16, 32>}, {transform_indices = @transform_1, window_bounds = array<i64: 1, 16, 32>}, {transform_indices = @transform_2, window_bounds = array<i64: 1, 16, 32>}, {pipeline_mode = #tpu.pipeline_mode<synchronous>, transform_indices = @transform_3, window_bounds = array<i64: 32, 32>}, {pipeline_mode = #tpu.pipeline_mode<synchronous>, transform_indices = @transform_4, window_bounds = array<i64: 1, 32>}, {pipeline_mode = #tpu.pipeline_mode<synchronous>, transform_indices = @transform_5, window_bounds = array<i64: 32, 32>}, {pipeline_mode = #tpu.pipeline_mode<synchronous>, transform_indices = @transform_6, window_bounds = array<i64: 32, 32>}, {pipeline_mode = #tpu.pipeline_mode<synchronous>, transform_indices = @transform_7, window_bounds = array<i64: 1, 32>}, {pipeline_mode = #tpu.pipeline_mode<synchronous>, transform_indices = @transform_8, window_bounds = array<i64: 1, 1>}, {transform_indices = @transform_9, window_bounds = array<i64: 1, 16, 32>}, {transform_indices = @transform_10, window_bounds = array<i64: 1, 1, 16>}]} {
    %c0 = arith.constant 0 : index
    %c0_0 = arith.constant 0 : index
    %c0_1 = arith.constant 0 : index
    %0 = vector.load %arg2[%c0, %c0_0, %c0_1] : memref<1x16x32xf32, #tpu.memory_space<vmem>>, vector<1x16x32xf32>
    %1 = vector.shape_cast %0 : vector<1x16x32xf32> to vector<16x32xf32>
    %c0_2 = arith.constant 0 : index
    %c0_3 = arith.constant 0 : index
    %c0_4 = arith.constant 0 : index
    %2 = vector.load %arg3[%c0_2, %c0_3, %c0_4] : memref<1x16x32xf32, #tpu.memory_space<vmem>>, vector<1x16x32xf32>
    %3 = vector.shape_cast %2 : vector<1x16x32xf32> to vector<16x32xf32>
    %c0_5 = arith.constant 0 : index
    %c0_6 = arith.constant 0 : index
    %4 = vector.load %arg5[%c0_5, %c0_6] : memref<32x32xf32, #tpu.memory_space<vmem>>, vector<32x32xf32>
    %c0_7 = arith.constant 0 : index
    %c0_8 = arith.constant 0 : index
    %5 = vector.load %arg6[%c0_7, %c0_8] : memref<1x32xf32, #tpu.memory_space<vmem>>, vector<1x32xf32>
    %cst = arith.constant dense<0.000000e+00> : vector<16x32xf32>
    %6 = tpu.matmul %1, %4, %cst {dimension_numbers = #tpu.dot_dimension_numbers<[1], [0], [0], [1], [0, 0, 1, 1], [], []>} : vector<16x32xf32>, vector<32x32xf32>, vector<16x32xf32> -> vector<16x32xf32>
    %7 = vector.broadcast %5 : vector<1x32xf32> to vector<16x32xf32>
    %8 = arith.addf %6, %7 : vector<16x32xf32>
    %cst_9 = arith.constant dense<0.000000e+00> : vector<16x32xf32>
    %9 = tpu.matmul %3, %4, %cst_9 {dimension_numbers = #tpu.dot_dimension_numbers<[1], [0], [0], [1], [0, 0, 1, 1], [], []>} : vector<16x32xf32>, vector<32x32xf32>, vector<16x32xf32> -> vector<16x32xf32>
    %10 = vector.broadcast %5 : vector<1x32xf32> to vector<16x32xf32>
    %11 = arith.addf %9, %10 : vector<16x32xf32>
    %c0_10 = arith.constant 0 : index
    %c0_11 = arith.constant 0 : index
    %12 = vector.load %arg7[%c0_10, %c0_11] : memref<32x32xf32, #tpu.memory_space<vmem>>, vector<32x32xf32>
    %cst_12 = arith.constant dense<0.000000e+00> : vector<16x32xf32>
    %13 = tpu.matmul %8, %12, %cst_12 {dimension_numbers = #tpu.dot_dimension_numbers<[1], [0], [0], [1], [0, 0, 1, 1], [], []>} : vector<16x32xf32>, vector<32x32xf32>, vector<16x32xf32> -> vector<16x32xf32>
    %c0_13 = arith.constant 0 : index
    %c0_14 = arith.constant 0 : index
    %14 = vector.load %arg8[%c0_13, %c0_14] : memref<32x32xf32, #tpu.memory_space<vmem>>, vector<32x32xf32>
    %cst_15 = arith.constant dense<0.000000e+00> : vector<16x32xf32>
    %15 = tpu.matmul %11, %14, %cst_15 {dimension_numbers = #tpu.dot_dimension_numbers<[1], [0], [0], [1], [0, 0, 1, 1], [], []>} : vector<16x32xf32>, vector<32x32xf32>, vector<16x32xf32> -> vector<16x32xf32>
    %16 = arith.addf %13, %15 : vector<16x32xf32>
    %c0_16 = arith.constant 0 : index
    %c0_17 = arith.constant 0 : index
    %c0_18 = arith.constant 0 : index
    %17 = vector.load %arg4[%c0_16, %c0_17, %c0_18] : memref<1x16x32xf32, #tpu.memory_space<vmem>>, vector<1x16x32xf32>
    %18 = vector.shape_cast %17 : vector<1x16x32xf32> to vector<16x32xf32>
    %19 = arith.addf %16, %18 : vector<16x32xf32>
    %cst_19 = arith.constant 5.000000e-01 : f32
    %20 = vector.broadcast %cst_19 : f32 to vector<16x32xf32>
    %21 = arith.mulf %20, %19 : vector<16x32xf32>
    %cst_20 = arith.constant 0.707106769 : f32
    %22 = vector.broadcast %cst_20 : f32 to vector<16x32xf32>
    %23 = arith.mulf %19, %22 : vector<16x32xf32>
    %24 = math.erf %23 : vector<16x32xf32>
    %cst_21 = arith.constant 1.000000e+00 : f32
    %25 = vector.broadcast %cst_21 : f32 to vector<16x32xf32>
    %26 = arith.addf %25, %24 : vector<16x32xf32>
    %27 = arith.mulf %21, %26 : vector<16x32xf32>
    %c0_22 = arith.constant 0 : index
    %c0_23 = arith.constant 0 : index
    %28 = vector.load %arg9[%c0_22, %c0_23] : memref<1x32xf32, #tpu.memory_space<vmem>>, vector<1x32xf32>
    %c0_24 = arith.constant 0 : index
    %c0_25 = arith.constant 0 : index
    %29 = vector.load %arg10[%c0_24, %c0_25] : memref<1x1xf32, #tpu.memory_space<vmem>>, vector<1x1xf32>
    %30 = vector.broadcast %28 : vector<1x32xf32> to vector<16x32xf32>
    %31 = arith.mulf %27, %30 : vector<16x32xf32>
    %cst_26 = arith.constant dense<0.000000e+00> : vector<16xf32>
    %32 = vector.multi_reduction <add>, %31, %cst_26 [1] : vector<16x32xf32> to vector<16xf32>
    %33 = vector.shape_cast %32 : vector<16xf32> to vector<16x1xf32>
    %34 = vector.broadcast %29 : vector<1x1xf32> to vector<16x1xf32>
    %35 = arith.addf %33, %34 : vector<16x1xf32>
    %36 = arith.negf %35 : vector<16x1xf32>
    %37 = math.exp %36 : vector<16x1xf32>
    %cst_27 = arith.constant 1.000000e+00 : f32
    %38 = vector.broadcast %cst_27 : f32 to vector<16x1xf32>
    %39 = arith.addf %38, %37 : vector<16x1xf32>
    %40 = arith.divf %38, %39 : vector<16x1xf32>
    %cst_28 = arith.constant 1.000000e+00 : f32
    %41 = vector.broadcast %cst_28 : f32 to vector<16x1xf32>
    %42 = arith.subf %41, %40 : vector<16x1xf32>
    %43 = vector.broadcast %42 : vector<16x1xf32> to vector<16x32xf32>
    %44 = arith.mulf %43, %8 : vector<16x32xf32>
    %45 = vector.broadcast %40 : vector<16x1xf32> to vector<16x32xf32>
    %46 = arith.mulf %45, %11 : vector<16x32xf32>
    %47 = arith.addf %44, %46 : vector<16x32xf32>
    %c0_29 = arith.constant 0 : index
    %c0_30 = arith.constant 0 : index
    %c0_31 = arith.constant 0 : index
    %48 = vector.load %arg11[%c0_29, %c0_30, %c0_31] : memref<1x16x32xf32, #tpu.memory_space<vmem>>, vector<1x16x32xf32>
    %49 = vector.shape_cast %48 : vector<1x16x32xf32> to vector<16x32xf32>
    %50 = vector.shape_cast %47 : vector<16x32xf32> to vector<1x16x32xf32>
    tpu.vector_store %arg11[%c0_29, %c0_30, %c0_31], %50 {strides = array<i32>} : memref<1x16x32xf32, #tpu.memory_space<vmem>>, vector<1x16x32xf32>,
    %cst_32 = arith.constant dense<0.000000e+00> : vector<1x16xf32>
    %51 = tpu.matmul %28, %27, %cst_32 {dimension_numbers = #tpu.dot_dimension_numbers<[1], [1], [0], [0], [0, 0, 1, 0], [], []>} : vector<1x32xf32>, vector<16x32xf32>, vector<1x16xf32> -> vector<1x16xf32>
    %52 = vector.broadcast %29 : vector<1x1xf32> to vector<1x16xf32>
    %53 = arith.addf %51, %52 : vector<1x16xf32>
    %54 = arith.negf %53 : vector<1x16xf32>
    %55 = math.exp %54 : vector<1x16xf32>
    %cst_33 = arith.constant 1.000000e+00 : f32
    %56 = vector.broadcast %cst_33 : f32 to vector<1x16xf32>
    %57 = arith.addf %56, %55 : vector<1x16xf32>
    %58 = arith.divf %56, %57 : vector<1x16xf32>
    %c0_34 = arith.constant 0 : index
    %c0_35 = arith.constant 0 : index
    %c0_36 = arith.constant 0 : index
    %59 = vector.load %arg12[%c0_34, %c0_35, %c0_36] : memref<1x1x16xf32, #tpu.memory_space<vmem>>, vector<1x1x16xf32>
    %60 = vector.shape_cast %59 : vector<1x1x16xf32> to vector<1x16xf32>
    %61 = vector.shape_cast %58 : vector<1x16xf32> to vector<1x1x16xf32>
    tpu.vector_store %arg12[%c0_34, %c0_35, %c0_36], %61 {strides = array<i32>} : memref<1x1x16xf32, #tpu.memory_space<vmem>>, vector<1x1x16xf32>,
    return
  }
  func.func @transform_0(%arg0: i32, %arg1: i32) -> (i32, i32, i32) {
    %c0_i32 = arith.constant 0 : i32
    %c0_i32_0 = arith.constant 0 : i32
    return %arg0, %arg1, %c0_i32 : i32, i32, i32
  }
  func.func @transform_1(%arg0: i32, %arg1: i32) -> (i32, i32, i32) {
    %c0_i32 = arith.constant 0 : i32
    %c0_i32_0 = arith.constant 0 : i32
    return %arg0, %arg1, %c0_i32 : i32, i32, i32
  }
  func.func @transform_2(%arg0: i32, %arg1: i32) -> (i32, i32, i32) {
    %c0_i32 = arith.constant 0 : i32
    %c0_i32_0 = arith.constant 0 : i32
    return %arg0, %arg1, %c0_i32 : i32, i32, i32
  }
  func.func @transform_3(%arg0: i32, %arg1: i32) -> (i32, i32) {
    %c0_i32 = arith.constant 0 : i32
    %c0_i32_0 = arith.constant 0 : i32
    %c0_i32_1 = arith.constant 0 : i32
    return %c0_i32, %c0_i32_0 : i32, i32
  }
  func.func @transform_4(%arg0: i32, %arg1: i32) -> (i32, i32) {
    %c0_i32 = arith.constant 0 : i32
    %c0_i32_0 = arith.constant 0 : i32
    %c0_i32_1 = arith.constant 0 : i32
    return %c0_i32, %c0_i32_0 : i32, i32
  }
  func.func @transform_5(%arg0: i32, %arg1: i32) -> (i32, i32) {
    %c0_i32 = arith.constant 0 : i32
    %c0_i32_0 = arith.constant 0 : i32
    %c0_i32_1 = arith.constant 0 : i32
    return %c0_i32, %c0_i32_0 : i32, i32
  }
  func.func @transform_6(%arg0: i32, %arg1: i32) -> (i32, i32) {
    %c0_i32 = arith.constant 0 : i32
    %c0_i32_0 = arith.constant 0 : i32
    %c0_i32_1 = arith.constant 0 : i32
    return %c0_i32, %c0_i32_0 : i32, i32
  }
  func.func @transform_7(%arg0: i32, %arg1: i32) -> (i32, i32) {
    %c0_i32 = arith.constant 0 : i32
    %c0_i32_0 = arith.constant 0 : i32
    %c0_i32_1 = arith.constant 0 : i32
    return %c0_i32, %c0_i32_0 : i32, i32
  }
  func.func @transform_8(%arg0: i32, %arg1: i32) -> (i32, i32) {
    %c0_i32 = arith.constant 0 : i32
    %c0_i32_0 = arith.constant 0 : i32
    %c0_i32_1 = arith.constant 0 : i32
    return %c0_i32, %c0_i32_0 : i32, i32
  }
  func.func @transform_9(%arg0: i32, %arg1: i32) -> (i32, i32, i32) {
    %c0_i32 = arith.constant 0 : i32
    %c0_i32_0 = arith.constant 0 : i32
    return %arg0, %arg1, %c0_i32 : i32, i32, i32
  }
  func.func @transform_10(%arg0: i32, %arg1: i32) -> (i32, i32, i32) {
    %c0_i32 = arith.constant 0 : i32
    %c0_i32_0 = arith.constant 0 : i32
    return %arg0, %c0_i32, %arg1 : i32, i32, i32
  }
}

</mosaic_0001>

<bundles_post_ra>
// kernel: tpu_custom_call.1
= control target key start
LH: loop header
LB: loop body
LE: loop exit
PB: predicated region body
PF: predicated region fallthrough
CT: control target
= control target key end

     0   :  { %s964_s0 = inlined_call_operand.hbm [shape: f32[1,16,32], index: 0, kind: input, shape index: {}]   ;;  %s965_s1 = inlined_call_operand.hbm [shape: f32[1,16,32], index: 1, kind: input, shape index: {}]   ;;  %s966_s2 = inlined_call_operand.hbm [shape: f32[1,16,32], index: 2, kind: input, shape index: {}]   ;;  %s967_s3 = inlined_call_operand.hbm [shape: f32[32,32], index: 3, kind: input, shape index: {}]   ;;  %s968_s4 = inlined_call_operand.vmem [shape: f32[1,32], index: 4, kind: input, shape index: {}]   ;;  %s969_s5 = inlined_call_operand.hbm [shape: f32[32,32], index: 5, kind: input, shape index: {}]   ;;  %s970_s6 = inlined_call_operand.hbm [shape: f32[32,32], index: 6, kind: input, shape index: {}]   ;;  %s971_s7 = inlined_call_operand.vmem [shape: f32[1,32], index: 7, kind: input, shape index: {}]   ;;  %s972_s8 = inlined_call_operand.<no memory space> [shape: f32[1,1], index: 8, kind: input, shape index: {}]   ;;  %s973_s9 = inlined_call_operand.hbm [shape: f32[1,16,32], index: 9, kind: output, shape index: {0}]   ;;  %s974_s10 = inlined_call_operand.hbm [shape: f32[1,1,16], index: 10, kind: output, shape index: {1}]  }
   0x1   :  { %v16_v0 = vstv %s972_s8 }
   0x2   :  { %17 = vst [vmem:[#allocation2] sm:$0x1] %v16_v0 }
   0x3   :  { %18 = vsyncpa [#allocation4], 0 }
   0x4   :  { %19 = vsyncpa [#allocation7], 0 }
   0x5   :  { %20 = vsyncpa [#allocation10], 0 }
   0x6   :  { %21 = vsyncpa [#allocation13], 0 }
   0x7   :  { %22 = vsyncpa [#allocation5], 0 }
   0x8   :  { %23 = vsyncpa [#allocation16], 0  ;;  %s41_s17 = sshll.u32 %s965_s1, 4  ;;  %s792_s18 = smov [#allocation6]   ;;  %s42_s17 = int_to_ptr.hbm [resolvable:$true] %s41_s17 }
   0x9   :  { %s43_s19 = sshll.u32 %s792_s18, 4  ;;  %s67_s22 = sshll.u32 %s967_s3, 4  ;;  %s44_s19 = int_to_ptr.vmem [resolvable:$true] %s43_s19  ;;  %s68_s22 = int_to_ptr.hbm [resolvable:$true] %s67_s22 }
   0xa   :  { %s793_s8 = smov 128   ;;  %s794_s23 = smov 8  }
   0xb   :  { %49 = dma.hbm_to_vmem [thread:$0]  %s42_s17, 256, %s44_s19, [#allocation7], %s793_s8, %s793_s8, %s794_s23  }
   0xc   :  { %s795_s24 = smov [#allocation9]   ;;  %s28_s1 = sshll.u32 %s964_s0, 4  ;;  %s29_s1 = int_to_ptr.hbm [resolvable:$true] %s28_s1 }
   0xd   :  { %s69_s25 = sshll.u32 %s795_s24, 4  ;;  %s54_s29 = sshll.u32 %s966_s2, 4  ;;  %s70_s25 = int_to_ptr.vmem [resolvable:$true] %s69_s25  ;;  %s55_s29 = int_to_ptr.hbm [resolvable:$true] %s54_s29 }
   0xe   :  { %75 = dma.hbm_to_vmem [thread:$0]  %s68_s22, 512, %s70_s25, [#allocation10], %s793_s8, %s793_s8, %s794_s23  }
   0xf   :  { %s796_s30 = smov [#allocation3]   ;;  %s797_s12 = smov [#allocation8]  }
  0x10   :  { %s30_s11 = sshll.u32 %s796_s30, 4  ;;  %s56_s0 = sshll.u32 %s797_s12, 4  ;;  %s31_s11 = int_to_ptr.vmem [resolvable:$true] %s30_s11  ;;  %s57_s0 = int_to_ptr.vmem [resolvable:$true] %s56_s0 }
  0x11   :  { %36 = dma.hbm_to_vmem [thread:$0]  %s29_s1, 256, %s31_s11, [#allocation4], %s793_s8, %s793_s8, %s794_s23  }
  0x12   :  { %s82_s15 = sshll.u32 %s969_s5, 4  ;;  %s95_s17 = sshll.u32 %s970_s6, 4  ;;  %s83_s15 = int_to_ptr.hbm [resolvable:$true] %s82_s15  ;;  %s96_s17 = int_to_ptr.hbm [resolvable:$true] %s95_s17 }
  0x13   :  { %62 = dma.hbm_to_vmem [thread:$0]  %s55_s29, 256, %s57_s0, [#allocation7], %s793_s8, %s793_s8, %s794_s23  }
  0x14   :  { %s798_s18 = smov [#allocation11]   ;;  %s799_s20 = smov [#allocation12]  }
  0x15   :  { %s84_s19 = sshll.u32 %s798_s18, 4  ;;  %s97_s5 = sshll.u32 %s799_s20, 4  ;;  %s85_s19 = int_to_ptr.vmem [resolvable:$true] %s84_s19  ;;  %s98_s5 = int_to_ptr.vmem [resolvable:$true] %s97_s5 }
  0x16   :  { %90 = dma.hbm_to_vmem [thread:$0]  %s83_s15, 512, %s85_s19, [#allocation10], %s793_s8, %s793_s8, %s794_s23  }
  0x17   :  { %103 = dma.hbm_to_vmem [thread:$0]  %s96_s17, 512, %s98_s5, [#allocation13], %s793_s8, %s793_s8, %s794_s23  }
  0x18   :  { %780 = dma.done.wait [#allocation4], 256  }
  0x19   :  { %781 = vsyncadd [#allocation4], 4294967040 }
  0x1a   :  { %782 = dma.done.wait [#allocation7], 512  }
  0x1b   :  { %783 = vsyncadd [#allocation7], 4294966784 }
  0x1c   :  { %784 = dma.done.wait [#allocation10], 1024  }
  0x1d   :  { %785 = vsyncadd [#allocation10], 4294966272 }
  0x1e   :  { %786 = dma.done.wait [#allocation13], 512  }
  0x1f   :  { %787 = vsyncadd [#allocation13], 4294966784  ;;  %v139_v1 = vld [vmem:[#allocation9 + $0x18] sm:$0xff]  ;;  %v138_v2 = vld [vmem:[#allocation9 + $0x10] sm:$0xff]  ;;  %vm144_vm0 = vcmask 261120   ;;  %s521_s3 = sshll.u32 %s974_s10, 4  ;;  %s522_s3 = int_to_ptr.hbm [resolvable:$true] %s521_s3 }
  0x20   :  { %163 = vmatpush.msra.mxu0 %v139_v1  ;;  %192 = vmatpush.msra.mxu1 %v139_v1  ;;  %v137_v3 = vld [vmem:[#allocation9 + $0x8] sm:$0xff]  ;;  %v210_v4 = vld [vmem:[#allocation12 + $0x18] sm:$0xff]  ;;  %v209_v6 = vld [vmem:[#allocation12 + $0x10] sm:$0xff]  ;;  %s802_s10 = smov [#allocation14]   ;;  %s507_s11 = sshll.u32 %s973_s9, 4  ;;  %s508_s11 = int_to_ptr.hbm [resolvable:$true] %s507_s11 }
  0x21   :  { %v206_v5 = vld [vmem:[#allocation11 + $0x18] sm:$0xff]  ;;  %v205_v7 = vld [vmem:[#allocation11 + $0x10] sm:$0xff]  ;;  %v136_v8 = vld [vmem:[#allocation9] sm:$0xff]  ;;  %229 = vmatpush.msra.mxu2 %v210_v4  ;;  %s505_s28 = sshll.u32 %s802_s10, 4  ;;  %s506_s28 = int_to_ptr.vmem [resolvable:$true] %s505_s28 }
  0x22   :  { %164 = vmatpush.msra.mxu0 %v138_v2  ;;  %193 = vmatpush.msra.mxu1 %v138_v2  ;;  %v132_v9 = vld [vmem:[#allocation3] sm:$0xff]  ;;  %v134_v10 = vld [vmem:[#allocation6] sm:$0xff]  ;;  %v133_v11 = vld [vmem:[#allocation3 + $0x8] sm:$0xff] }
  0x23   :  { %258 = vmatpush.msra.mxu3 %v206_v5  ;;  %230 = vmatpush.msra.mxu2 %v209_v6  ;;  %v135_v12 = vld [vmem:[#allocation6 + $0x8] sm:$0xff]  ;;  %v207_v15 = vld [vmem:[#allocation12] sm:$0xff]  ;;  %v269_v28 = vld [vmem:[#allocation8] sm:$0xff] }
  0x24   :  { %165 = vmatpush.msra.mxu0 %v137_v3  ;;  %194 = vmatpush.msra.mxu1 %v137_v3  ;;  %v208_v13 = vld [vmem:[#allocation12 + $0x8] sm:$0xff]  ;;  %v203_v16 = vld [vmem:[#allocation11] sm:$0xff]  ;;  %v270_v35 = vld [vmem:[#allocation8 + $0x8] sm:$0xff] }
  0x25   :  { %259 = vmatpush.msra.mxu3 %v205_v7  ;;  %v204_v14 = vld [vmem:[#allocation11 + $0x8] sm:$0xff]  ;;  %231 = vmatpush.msra.mxu2 %v208_v13 }
  0x26   :  { %166 = vmatpush.msra.mxu0 %v136_v8  ;;  %195 = vmatpush.msra.mxu1 %v136_v8  ;;  %v569_v17 = vld [vmem:[%s968_s4] ss:$0 sm:$0xff] }
  0x27   :  { %539 = vmatmul.msk.f32.vlgmr.msra.gmra.mxu0 %vm144_vm0, %v132_v9  ;;  %541 = vmatmul.msk.f32.vlgmr.msra.gmra.mxu1 %vm144_vm0, %v134_v10 }
  0x28   :  { %260 = vmatpush.msra.mxu3 %v204_v14  ;;  %232 = vmatpush.msra.mxu2 %v207_v15 }
  0x2a   :  { %261 = vmatpush.msra.mxu3 %v203_v16  ;;  %v362_v16 = vld [vmem:[#allocation2] sm:$0x1] }
  0x2f   :  { %540 = vmatmul.msk.f32.gmra.mxu0 %vm144_vm0, %v133_v11  ;;  %542 = vmatmul.msk.f32.gmra.mxu1 %vm144_vm0, %v135_v12 }
  0xa4   :  { %v168_v18 = vpop.f32.mrf.mxu0  ;;  %v197_v19 = vpop.f32.mrf.mxu1 }
  0xa5   :  { %v904_v20 = vadd.f32 %v569_v17, %v168_v18  ;;  %v906_v21 = vadd.f32 %v569_v17, %v197_v19  ;;  %v800_v18 = vmov 0  }
  0xa6   :  { %566 = vset.pattern.permute.xlu1 %v800_v18  ;;  %568 = vset.pattern.permute.xlu0 %v800_v18 }
  0xa7   :  { %543 = vmatmul.msk.f32.vlgmr.msra.gmra.mxu2 %vm144_vm0, %v906_v21  ;;  %545 = vmatmul.msk.f32.vlgmr.msra.gmra.mxu3 %vm144_vm0, %v904_v20 }
  0xa8   :  { %448 = vperm.xlu1 %566, %v362_v16   ;;  %567 = vset.pattern.permute.xlu2 %v800_v18 }
  0xac   :  { %v171_v22 = vpop.f32.mrf.mxu0  ;;  %v200_v23 = vpop.f32.mrf.mxu1 }
  0xad   :  { %v912_v24 = vadd.f32 %v569_v17, %v171_v22  ;;  %v914_v25 = vadd.f32 %v569_v17, %v200_v23 }
  0xaf   :  { %544 = vmatmul.msk.f32.gmra.mxu2 %vm144_vm0, %v914_v25  ;;  %546 = vmatmul.msk.f32.gmra.mxu3 %vm144_vm0, %v912_v24 }
 0x12a   :  { %v234_v26 = vpop.f32.mrf.mxu2  ;;  %v263_v27 = vpop.f32.mrf.mxu3 }
 0x12b   :  { %v264_v29 = vadd.f32 %v263_v27, %v234_v26 }
 0x12d   :  { %v920_v30 = vadd.f32 %v269_v28, %v264_v29 }
 0x12f   :  { %v923_v31 = vmul.f32 0.70710677, %v920_v30 }
 0x131   :  { %v277_v32 = vmul.f32 %v923_v31, %v923_v31 }
 0x132   :  { %v237_v33 = vpop.f32.mrf.mxu2  ;;  %v266_v34 = vpop.f32.mrf.mxu3 }
 0x133   :  { %v278_v36 = vmin.f32 %v277_v32, 16.0  ;;  %v267_v37 = vadd.f32 %v266_v34, %v237_v33 }
 0x135   :  { %v279_v38 = vmul.f32 2.1237322e-06, %v278_v36  ;;  %v927_v39 = vadd.f32 %v270_v35, %v267_v37  ;;  %v290_v40 = vmul.f32 3.8918573e-05, %v278_v36 }
 0x137   :  { %v280_v41 = vadd.f32 0.00028619796, %v279_v38  ;;  %v930_v42 = vmul.f32 0.70710677, %v927_v39  ;;  %v291_v43 = vadd.f32 0.001143296, %v290_v40 }
 0x139   :  { %v281_v44 = vmul.f32 %v280_v41, %v278_v36  ;;  %v317_v45 = vmul.f32 %v930_v42, %v930_v42  ;;  %v292_v46 = vmul.f32 %v291_v43, %v278_v36 }
 0x13b   :  { %v318_v47 = vmin.f32 %v317_v45, 16.0  ;;  %v293_v48 = vadd.f32 0.014752088, %v292_v46  ;;  %v282_v49 = vadd.f32 0.0036580483, %v281_v44 }
 0x13d   :  { %v319_v50 = vmul.f32 2.1237322e-06, %v318_v47  ;;  %v330_v51 = vmul.f32 3.8918573e-05, %v318_v47  ;;  %v294_v52 = vmul.f32 %v293_v48, %v278_v36  ;;  %v283_v56 = vmul.f32 %v282_v49, %v278_v36 }
 0x13f   :  { %v320_v53 = vadd.f32 0.00028619796, %v319_v50  ;;  %v331_v54 = vadd.f32 0.001143296, %v330_v51  ;;  %v295_v55 = vadd.f32 0.112945676, %v294_v52 }
 0x140   :  { %v284_v63 = vadd.f32 0.05243302, %v283_v56 }
 0x141   :  { %v321_v57 = vmul.f32 %v320_v53, %v318_v47  ;;  %v332_v58 = vmul.f32 %v331_v54, %v318_v47  ;;  %v296_v59 = vmul.f32 %v295_v55, %v278_v36 }
 0x142   :  { %v285_v5 = vmul.f32 %v284_v63, %v278_v36  ;;  %v571_v63 = vld [vmem:[#allocation2] ss:$0 sm:$0xff] }
 0x143   :  { %v333_v60 = vadd.f32 0.014752088, %v332_v58  ;;  %v322_v61 = vadd.f32 0.0036580483, %v321_v57  ;;  %v297_v62 = vadd.f32 0.4994258, %v296_v59 }
 0x144   :  { %v286_v9 = vadd.f32 0.18741608, %v285_v5 }
 0x145   :  { %v334_v0 = vmul.f32 %v333_v60, %v318_v47  ;;  %v298_v1 = vmul.f32 %v297_v62, %v278_v36  ;;  %v323_v3 = vmul.f32 %v322_v61, %v318_v47 }
 0x146   :  { %v287_v14 = vmul.f32 %v286_v9, %v278_v36 }
 0x147   :  { %v335_v2 = vadd.f32 0.112945676, %v334_v0  ;;  %v299_v4 = vadd.f32 1.0, %v298_v1  ;;  %v324_v8 = vadd.f32 0.05243302, %v323_v3 }
 0x148   :  { %v288_v23 = vadd.f32 1.1283791, %v287_v14 }
 0x149   :  { %v336_v6 = vmul.f32 %v335_v2, %v318_v47  ;;  %572 = vrcp.f32 %v299_v4  ;;  %v325_v13 = vmul.f32 %v324_v8, %v318_v47  ;;  %v311_v22 = vand.u32 2147483648, %v299_v4 }
 0x14a   :  { %v309_v27 = vand.u32 2147483647, %v299_v4  ;;  %vm305_vm2 = vweird.f32 %v299_v4  ;;  %v289_v35 = vmul.f32 %v288_v23, %v923_v31  ;;  %v570_v31 = vld [vmem:[%s971_s7] ss:$0 sm:$0xff] }
 0x14b   :  { %v337_v7 = vadd.f32 0.4994258, %v336_v6  ;;  %v326_v19 = vadd.f32 0.18741608, %v325_v13  ;;  %v312_v33 = vor.u32 1.1754944e-38, %v311_v22 }
 0x14c   :  { %vm310_vm4 = vcmp.eq.f32.partialorder %v309_v27, 8.507059e+37 }
 0x14d   :  { %v338_v10 = vmul.f32 %v337_v7, %v318_v47  ;;  %v327_v32 = vmul.f32 %v326_v19, %v318_v47  ;;  %v273_v47 = vmul.f32 0.5, %v920_v30  ;;  %v274_v30 = vmul.f32 0.5, %v927_v39 }
 0x14f   :  { %v339_v11 = vadd.f32 1.0, %v338_v10  ;;  %v573_v12 = vpop.eup %572  ;;  %v328_v43 = vadd.f32 1.1283791, %v327_v32 }
 0x150   :  { %v301_v15 = vmul.f32 %v573_v12, %v299_v4  ;;  %vm306_vm1 = vweird.f32 %v573_v12 }
 0x151   :  { %574 = vrcp.f32 %v339_v11  ;;  %vm307_vm3 = vmor %vm305_vm2, %vm306_vm1  ;;  %v351_v41 = vand.u32 2147483648, %v339_v11  ;;  %v349_v45 = vand.u32 2147483647, %v339_v11  ;;  %vm345_vm6 = vweird.f32 %v339_v11 }
 0x152   :  { %v302_v17 = vsub.f32 1.0, %v301_v15  ;;  %v329_v51 = vmul.f32 %v328_v43, %v930_v42  ;;  %v361_v42 = vld [vmem:[%s971_s7] sm:$0x1]  ;;  %s801_s7 = smov [#allocation15]  }
 0x153   :  { %v352_v50 = vor.u32 1.1754944e-38, %v351_v41  ;;  %vm350_vm8 = vcmp.eq.f32.partialorder %v349_v45, 8.507059e+37  ;;  %s519_s26 = sshll.u32 %s801_s7, 4  ;;  %s520_s26 = int_to_ptr.vmem [resolvable:$true] %s519_s26 }
 0x154   :  { %v303_v26 = vmul.f32 %v573_v12, %v302_v17 }
 0x156   :  { %v304_v29 = vadd.f32 %v573_v12, %v303_v26 }
 0x157   :  { %v575_v28 = vpop.eup %574 }
 0x158   :  { %v341_v34 = vmul.f32 %v575_v28, %v339_v11  ;;  %v308_v36 = vsel %vm307_vm3, %v573_v12, %v304_v29  ;;  %vm346_vm5 = vweird.f32 %v575_v28 }
 0x159   :  { %v313_v37 = vsel %vm310_vm4, %v312_v33, %v308_v36  ;;  %vm347_vm7 = vmor %vm345_vm6, %vm346_vm5  ;;  %vm499_vm6 = vcmask 122880  }
 0x15a   :  { %v342_v38 = vsub.f32 1.0, %v341_v34  ;;  %v314_v40 = vmul.f32 %v313_v37, %v289_v35  ;;  %v449_v37 = vpop.permute.xlu1 %448 }
 0x15c   :  { %v343_v44 = vmul.f32 %v575_v28, %v342_v38  ;;  %v547_v46 = vclamps-f32 %v314_v40, 1.0  ;;  %v451_v38 = vperm.slane %v449_v37, 0 }
 0x15e   :  { %v344_v48 = vadd.f32 %v575_v28, %v343_v44  ;;  %v357_v49 = vadd.f32 1.0, %v547_v46 }
 0x160   :  { %v348_v52 = vsel %vm347_vm7, %v575_v28, %v344_v48  ;;  %v359_v53 = vmul.f32 %v357_v49, %v273_v47 }
 0x161   :  { %v353_v54 = vsel %vm350_vm8, %v352_v50, %v348_v52 }
 0x162   :  { %v354_v55 = vmul.f32 %v353_v54, %v329_v51  ;;  %v366_v56 = vmul.f32 %v570_v31, %v359_v53 }
 0x164   :  { %v548_v57 = vclamps-f32 %v354_v55, 1.0  ;;  %v368_v58 = vsel %vm144_vm0, %v366_v56, 0.0 }
 0x165   :  { %369 = vadd.xlane.f32.xlu0 %v368_v58 }
 0x166   :  { %v358_v59 = vadd.f32 1.0, %v548_v57 }
 0x168   :  { %v360_v60 = vmul.f32 %v358_v59, %v274_v30 }
 0x16a   :  { %551 = vmatpush.xpose.msk.msrb.mxu0 %vm144_vm0, %v360_v60  ;;  %v367_v61 = vmul.f32 %v570_v31, %v360_v60 }
 0x16c   :  { %v371_v62 = vsel %vm144_vm0, %v367_v61, 0.0 }
 0x16d   :  { %372 = vadd.xlane.f32.xlu0 %v371_v62 }
 0x16e   :  { %552 = vmatpush.xpose.msk.msrb.mxu0 %vm144_vm0, %v359_v53 }
 0x171   :  { %553 = vmatmul.msk.f32.vlgmr.msrb.gmra.mxu0 %vm144_vm0, %v361_v42 }
 0x1d8   :  { %v370_v0 = vpop.xlane.xlu0 %369 }
 0x1d9   :  { %v377_v39 = vadd.f32 %v571_v63, %v370_v0 }
 0x1db   :  { %v549_v1 = vmul.f32 -1.442695, %v377_v39 }
 0x1dd   :  { %576 = vpow2.f32 %v549_v1 }
 0x1e0   :  { %v373_v2 = vpop.xlane.xlu0 %372 }
 0x1e1   :  { %v378_v3 = vadd.f32 %v571_v63, %v373_v2 }
 0x1e3   :  { %v577_v4 = vpop.eup %576  ;;  %v550_v5 = vmul.f32 -1.442695, %v378_v3 }
 0x1e4   :  { %v385_v6 = vadd.f32 1.0, %v577_v4 }
 0x1e5   :  { %578 = vpow2.f32 %v550_v5 }
 0x1e6   :  { %580 = vrcp.f32 %v385_v6  ;;  %v398_v12 = vand.u32 2147483648, %v385_v6  ;;  %v396_v14 = vand.u32 2147483647, %v385_v6  ;;  %vm392_vm10 = vweird.f32 %v385_v6 }
 0x1e8   :  { %v399_v17 = vor.u32 1.1754944e-38, %v398_v12  ;;  %vm397_vm12 = vcmp.eq.f32.partialorder %v396_v14, 8.507059e+37 }
 0x1eb   :  { %v579_v7 = vpop.eup %578 }
 0x1ec   :  { %v581_v8 = vpop.eup %580  ;;  %v386_v9 = vadd.f32 1.0, %v579_v7 }
 0x1ed   :  { %v388_v10 = vmul.f32 %v581_v8, %v385_v6  ;;  %vm393_vm9 = vweird.f32 %v581_v8 }
 0x1ee   :  { %582 = vrcp.f32 %v386_v9  ;;  %vm394_vm11 = vmor %vm392_vm10, %vm393_vm9  ;;  %v413_v27 = vand.u32 2147483648, %v386_v9  ;;  %v411_v29 = vand.u32 2147483647, %v386_v9  ;;  %vm407_vm14 = vweird.f32 %v386_v9  ;;  %v477_v40 = vpop.f32.mrf.mxu0 }
 0x1ef   :  { %v389_v11 = vsub.f32 1.0, %v388_v10  ;;  %v478_v41 = vadd.f32 %v477_v40, %v451_v38 }
 0x1f0   :  { %v414_v33 = vor.u32 1.1754944e-38, %v413_v27  ;;  %vm412_vm1 = vcmp.eq.f32.partialorder %v411_v29, 8.507059e+37 }
 0x1f1   :  { %v390_v13 = vmul.f32 %v581_v8, %v389_v11  ;;  %v554_v43 = vmul.f32 -1.442695, %v478_v41 }
 0x1f3   :  { %v391_v15 = vadd.f32 %v581_v8, %v390_v13  ;;  %584 = vpow2.f32 %v554_v43 }
 0x1f4   :  { %v583_v16 = vpop.eup %582 }
 0x1f5   :  { %v395_v18 = vsel %vm394_vm11, %v581_v8, %v391_v15  ;;  %v403_v19 = vmul.f32 %v583_v16, %v386_v9  ;;  %vm408_vm13 = vweird.f32 %v583_v16 }
 0x1f6   :  { %v400_v22 = vsel %vm397_vm12, %v399_v17, %v395_v18  ;;  %vm409_vm15 = vmor %vm407_vm14, %vm408_vm13 }
 0x1f7   :  { %v417_v23 = vsub.f32 1.0, %v400_v22  ;;  %v404_v26 = vsub.f32 1.0, %v403_v19 }
 0x1f9   :  { %421 = vperm.xlu1 %566, %v417_v23   ;;  %v405_v28 = vmul.f32 %v583_v16, %v404_v26  ;;  %v585_v44 = vpop.eup %584 }
 0x1fa   :  { %v483_v45 = vadd.f32 1.0, %v585_v44 }
 0x1fb   :  { %v406_v32 = vadd.f32 %v583_v16, %v405_v28 }
 0x1fc   :  { %586 = vrcp.f32 %v483_v45  ;;  %v495_v31 = vand.u32 2147483648, %v483_v45  ;;  %vm489_vm2 = vweird.f32 %v483_v45  ;;  %v493_v51 = vand.u32 2147483647, %v483_v45 }
 0x1fd   :  { %v410_v34 = vsel %vm409_vm15, %v583_v16, %v406_v32 }
 0x1fe   :  { %v415_v35 = vsel %vm412_vm1, %v414_v33, %v410_v34  ;;  %v496_v52 = vor.u32 1.1754944e-38, %v495_v31  ;;  %vm494_vm5 = vcmp.eq.f32.partialorder %v493_v51, 8.507059e+37 }
 0x1ff   :  { %438 = vperm.xlu0 %568, %v415_v35   ;;  %v418_v36 = vsub.f32 1.0, %v415_v35 }
 0x201   :  { %426 = vperm.xlu2 %567, %v418_v36  }
 0x202   :  { %v587_v46 = vpop.eup %586 }
 0x203   :  { %v485_v48 = vmul.f32 %v587_v46, %v483_v45  ;;  %vm490_vm3 = vweird.f32 %v587_v46 }
 0x204   :  { %vm491_vm4 = vmor %vm489_vm2, %vm490_vm3 }
 0x205   :  { %v486_v47 = vsub.f32 1.0, %v485_v48 }
 0x207   :  { %v487_v49 = vmul.f32 %v587_v46, %v486_v47 }
 0x209   :  { %433 = vperm.xlu2 %567, %v400_v22   ;;  %v488_v50 = vadd.f32 %v587_v46, %v487_v49 }
 0x20b   :  { %v492_v53 = vsel %vm491_vm4, %v587_v46, %v488_v50 }
 0x20c   :  { %v497_v54 = vsel %vm494_vm5, %v496_v52, %v492_v53 }
 0x20d   :  { %500 = vst.msk [vmem:[#allocation15] sm:$0x1] %vm499_vm6, %v497_v54 }
 0x20e   :  { %524 = dma.vmem_to_hbm [thread:$0]  %s520_s26, 16, %s522_s3, [#allocation16]  }
 0x25b   :  { %v427_v55 = vpop.permute.xlu2 %426 }
 0x25c   :  { %v430_v61 = vmul.f32 %v427_v55, %v912_v24 }
 0x263   :  { %v434_v56 = vpop.permute.xlu2 %433 }
 0x264   :  { %v441_v58 = vmul.f32 %v434_v56, %v906_v21 }
 0x26b   :  { %v422_v57 = vpop.permute.xlu1 %421 }
 0x26c   :  { %v429_v30 = vmul.f32 %v422_v57, %v904_v20 }
 0x26e   :  { %v443_v59 = vadd.f32 %v441_v58, %v429_v30 }
 0x270   :  { %445 = vst.msk [vmem:[#allocation14] sm:$0xff] %vm144_vm0, %v443_v59 }
 0x271   :  { %v439_v60 = vpop.permute.xlu0 %438 }
 0x272   :  { %v442_v62 = vmul.f32 %v439_v60, %v914_v25 }
 0x274   :  { %v444_v42 = vadd.f32 %v442_v62, %v430_v61 }
 0x276   :  { %446 = vst.msk [vmem:[#allocation14 + $0x8] sm:$0xff] %vm144_vm0, %v444_v42 }
 0x277   :  { %513 = dma.vmem_to_hbm [thread:$0]  %s506_s28, 256, %s508_s11, [#allocation5], %s793_s8, %s793_s8, %s794_s23  }
 0x278   :  { %788 = dma.done.wait [#allocation5], 256  }
 0x279   :  { %789 = vsyncadd [#allocation5], 4294967040 }
 0x27a   :  { %790 = dma.done.wait [#allocation16], 16  }
 0x27b   :  { %791 = vsyncadd [#allocation16], 4294967280 }
 0x27c   :  { %533 = vsyncpa [#allocation4], 1 }
 0x27d   :  { %534 = vsyncpa [#allocation7], 1 }
 0x27e   :  { %535 = vsyncpa [#allocation10], 1 }
 0x27f   :  { %536 = vsyncpa [#allocation13], 1 }
 0x280   :  { %537 = vsyncpa [#allocation5], 1 }
 0x281   :  { %538 = vsyncpa [#allocation16], 1 }

// kernel: tpu_custom_call.1
= control target key start
LH: loop header
LB: loop body
LE: loop exit
PB: predicated region body
PF: predicated region fallthrough
CT: control target
= control target key end

     0   :  { %s964_s0 = inlined_call_operand.hbm [shape: f32[1,16,32], index: 0, kind: input, shape index: {}]   ;;  %s965_s1 = inlined_call_operand.hbm [shape: f32[1,16,32], index: 1, kind: input, shape index: {}]   ;;  %s966_s2 = inlined_call_operand.hbm [shape: f32[1,16,32], index: 2, kind: input, shape index: {}]   ;;  %s967_s3 = inlined_call_operand.hbm [shape: f32[32,32], index: 3, kind: input, shape index: {}]   ;;  %s968_s4 = inlined_call_operand.vmem [shape: f32[1,32], index: 4, kind: input, shape index: {}]   ;;  %s969_s5 = inlined_call_operand.hbm [shape: f32[32,32], index: 5, kind: input, shape index: {}]   ;;  %s970_s6 = inlined_call_operand.hbm [shape: f32[32,32], index: 6, kind: input, shape index: {}]   ;;  %s971_s7 = inlined_call_operand.vmem [shape: f32[1,32], index: 7, kind: input, shape index: {}]   ;;  %s972_s8 = inlined_call_operand.<no memory space> [shape: f32[1,1], index: 8, kind: input, shape index: {}]   ;;  %s973_s9 = inlined_call_operand.hbm [shape: f32[1,16,32], index: 9, kind: output, shape index: {0}]   ;;  %s974_s10 = inlined_call_operand.hbm [shape: f32[1,1,16], index: 10, kind: output, shape index: {1}]  }
   0x1   :  { %v16_v0 = vstv %s972_s8 }
   0x2   :  { %17 = vst [vmem:[#allocation2] sm:$0x1] %v16_v0 }
   0x3   :  { %18 = vsyncpa [#allocation4], 0 }
   0x4   :  { %19 = vsyncpa [#allocation7], 0 }
   0x5   :  { %20 = vsyncpa [#allocation10], 0 }
   0x6   :  { %21 = vsyncpa [#allocation13], 0 }
   0x7   :  { %22 = vsyncpa [#allocation5], 0 }
   0x8   :  { %23 = vsyncpa [#allocation16], 0  ;;  %s41_s17 = sshll.u32 %s965_s1, 4  ;;  %s792_s18 = smov [#allocation6]   ;;  %s42_s17 = int_to_ptr.hbm [resolvable:$true] %s41_s17 }
   0x9   :  { %s43_s19 = sshll.u32 %s792_s18, 4  ;;  %s67_s22 = sshll.u32 %s967_s3, 4  ;;  %s44_s19 = int_to_ptr.vmem [resolvable:$true] %s43_s19  ;;  %s68_s22 = int_to_ptr.hbm [resolvable:$true] %s67_s22 }
   0xa   :  { %s793_s8 = smov 128   ;;  %s794_s23 = smov 8  }
   0xb   :  { %49 = dma.hbm_to_vmem [thread:$0]  %s42_s17, 256, %s44_s19, [#allocation7], %s793_s8, %s793_s8, %s794_s23  }
   0xc   :  { %s795_s24 = smov [#allocation9]   ;;  %s28_s1 = sshll.u32 %s964_s0, 4  ;;  %s29_s1 = int_to_ptr.hbm [resolvable:$true] %s28_s1 }
   0xd   :  { %s69_s25 = sshll.u32 %s795_s24, 4  ;;  %s54_s29 = sshll.u32 %s966_s2, 4  ;;  %s70_s25 = int_to_ptr.vmem [resolvable:$true] %s69_s25  ;;  %s55_s29 = int_to_ptr.hbm [resolvable:$true] %s54_s29 }
   0xe   :  { %75 = dma.hbm_to_vmem [thread:$0]  %s68_s22, 512, %s70_s25, [#allocation10], %s793_s8, %s793_s8, %s794_s23  }
   0xf   :  { %s796_s30 = smov [#allocation3]   ;;  %s797_s12 = smov [#allocation8]  }
  0x10   :  { %s30_s11 = sshll.u32 %s796_s30, 4  ;;  %s56_s0 = sshll.u32 %s797_s12, 4  ;;  %s31_s11 = int_to_ptr.vmem [resolvable:$true] %s30_s11  ;;  %s57_s0 = int_to_ptr.vmem [resolvable:$true] %s56_s0 }
  0x11   :  { %36 = dma.hbm_to_vmem [thread:$0]  %s29_s1, 256, %s31_s11, [#allocation4], %s793_s8, %s793_s8, %s794_s23  }
  0x12   :  { %s82_s15 = sshll.u32 %s969_s5, 4  ;;  %s95_s17 = sshll.u32 %s970_s6, 4  ;;  %s83_s15 = int_to_ptr.hbm [resolvable:$true] %s82_s15  ;;  %s96_s17 = int_to_ptr.hbm [resolvable:$true] %s95_s17 }
  0x13   :  { %62 = dma.hbm_to_vmem [thread:$0]  %s55_s29, 256, %s57_s0, [#allocation7], %s793_s8, %s793_s8, %s794_s23  }
  0x14   :  { %s798_s18 = smov [#allocation11]   ;;  %s799_s20 = smov [#allocation12]  }
  0x15   :  { %s84_s19 = sshll.u32 %s798_s18, 4  ;;  %s97_s5 = sshll.u32 %s799_s20, 4  ;;  %s85_s19 = int_to_ptr.vmem [resolvable:$true] %s84_s19  ;;  %s98_s5 = int_to_ptr.vmem [resolvable:$true] %s97_s5 }
  0x16   :  { %90 = dma.hbm_to_vmem [thread:$0]  %s83_s15, 512, %s85_s19, [#allocation10], %s793_s8, %s793_s8, %s794_s23  }
  0x17   :  { %103 = dma.hbm_to_vmem [thread:$0]  %s96_s17, 512, %s98_s5, [#allocation13], %s793_s8, %s793_s8, %s794_s23  }
  0x18   :  { %780 = dma.done.wait [#allocation4], 256  }
  0x19   :  { %781 = vsyncadd [#allocation4], 4294967040 }
  0x1a   :  { %782 = dma.done.wait [#allocation7], 512  }
  0x1b   :  { %783 = vsyncadd [#allocation7], 4294966784 }
  0x1c   :  { %784 = dma.done.wait [#allocation10], 1024  }
  0x1d   :  { %785 = vsyncadd [#allocation10], 4294966272 }
  0x1e   :  { %786 = dma.done.wait [#allocation13], 512  }
  0x1f   :  { %787 = vsyncadd [#allocation13], 4294966784  ;;  %v139_v1 = vld [vmem:[#allocation9 + $0x18] sm:$0xff]  ;;  %v138_v2 = vld [vmem:[#allocation9 + $0x10] sm:$0xff]  ;;  %vm144_vm0 = vcmask 261120   ;;  %s521_s3 = sshll.u32 %s974_s10, 4  ;;  %s522_s3 = int_to_ptr.hbm [resolvable:$true] %s521_s3 }
  0x20   :  { %163 = vmatpush.msra.mxu0 %v139_v1  ;;  %192 = vmatpush.msra.mxu1 %v139_v1  ;;  %v137_v3 = vld [vmem:[#allocation9 + $0x8] sm:$0xff]  ;;  %v210_v4 = vld [vmem:[#allocation12 + $0x18] sm:$0xff]  ;;  %v209_v6 = vld [vmem:[#allocation12 + $0x10] sm:$0xff]  ;;  %s802_s10 = smov [#allocation14]   ;;  %s507_s11 = sshll.u32 %s973_s9, 4  ;;  %s508_s11 = int_to_ptr.hbm [resolvable:$true] %s507_s11 }
  0x21   :  { %v206_v5 = vld [vmem:[#allocation11 + $0x18] sm:$0xff]  ;;  %v205_v7 = vld [vmem:[#allocation11 + $0x10] sm:$0xff]  ;;  %v136_v8 = vld [vmem:[#allocation9] sm:$0xff]  ;;  %229 = vmatpush.msra.mxu2 %v210_v4  ;;  %s505_s28 = sshll.u32 %s802_s10, 4  ;;  %s506_s28 = int_to_ptr.vmem [resolvable:$true] %s505_s28 }
  0x22   :  { %164 = vmatpush.msra.mxu0 %v138_v2  ;;  %193 = vmatpush.msra.mxu1 %v138_v2  ;;  %v132_v9 = vld [vmem:[#allocation3] sm:$0xff]  ;;  %v134_v10 = vld [vmem:[#allocation6] sm:$0xff]  ;;  %v133_v11 = vld [vmem:[#allocation3 + $0x8] sm:$0xff] }
  0x23   :  { %258 = vmatpush.msra.mxu3 %v206_v5  ;;  %230 = vmatpush.msra.mxu2 %v209_v6  ;;  %v135_v12 = vld [vmem:[#allocation6 + $0x8] sm:$0xff]  ;;  %v207_v15 = vld [vmem:[#allocation12] sm:$0xff]  ;;  %v269_v28 = vld [vmem:[#allocation8] sm:$0xff] }
  0x24   :  { %165 = vmatpush.msra.mxu0 %v137_v3  ;;  %194 = vmatpush.msra.mxu1 %v137_v3  ;;  %v208_v13 = vld [vmem:[#allocation12 + $0x8] sm:$0xff]  ;;  %v203_v16 = vld [vmem:[#allocation11] sm:$0xff]  ;;  %v270_v35 = vld [vmem:[#allocation8 + $0x8] sm:$0xff] }
  0x25   :  { %259 = vmatpush.msra.mxu3 %v205_v7  ;;  %v204_v14 = vld [vmem:[#allocation11 + $0x8] sm:$0xff]  ;;  %231 = vmatpush.msra.mxu2 %v208_v13 }
  0x26   :  { %166 = vmatpush.msra.mxu0 %v136_v8  ;;  %195 = vmatpush.msra.mxu1 %v136_v8  ;;  %v569_v17 = vld [vmem:[%s968_s4] ss:$0 sm:$0xff] }
  0x27   :  { %539 = vmatmul.msk.f32.vlgmr.msra.gmra.mxu0 %vm144_vm0, %v132_v9  ;;  %541 = vmatmul.msk.f32.vlgmr.msra.gmra.mxu1 %vm144_vm0, %v134_v10 }
  0x28   :  { %260 = vmatpush.msra.mxu3 %v204_v14  ;;  %232 = vmatpush.msra.mxu2 %v207_v15 }
  0x2a   :  { %261 = vmatpush.msra.mxu3 %v203_v16  ;;  %v362_v16 = vld [vmem:[#allocation2] sm:$0x1] }
  0x2f   :  { %540 = vmatmul.msk.f32.gmra.mxu0 %vm144_vm0, %v133_v11  ;;  %542 = vmatmul.msk.f32.gmra.mxu1 %vm144_vm0, %v135_v12 }
  0xa4   :  { %v168_v18 = vpop.f32.mrf.mxu0  ;;  %v197_v19 = vpop.f32.mrf.mxu1 }
  0xa5   :  { %v904_v20 = vadd.f32 %v569_v17, %v168_v18  ;;  %v906_v21 = vadd.f32 %v569_v17, %v197_v19  ;;  %v800_v18 = vmov 0  }
  0xa6   :  { %566 = vset.pattern.permute.xlu1 %v800_v18  ;;  %568 = vset.pattern.permute.xlu0 %v800_v18 }
  0xa7   :  { %543 = vmatmul.msk.f32.vlgmr.msra.gmra.mxu2 %vm144_vm0, %v906_v21  ;;  %545 = vmatmul.msk.f32.vlgmr.msra.gmra.mxu3 %vm144_vm0, %v904_v20 }
  0xa8   :  { %448 = vperm.xlu1 %566, %v362_v16   ;;  %567 = vset.pattern.permute.xlu2 %v800_v18 }
  0xac   :  { %v171_v22 = vpop.f32.mrf.mxu0  ;;  %v200_v23 = vpop.f32.mrf.mxu1 }
  0xad   :  { %v912_v24 = vadd.f32 %v569_v17, %v171_v22  ;;  %v914_v25 = vadd.f32 %v569_v17, %v200_v23 }
  0xaf   :  { %544 = vmatmul.msk.f32.gmra.mxu2 %vm144_vm0, %v914_v25  ;;  %546 = vmatmul.msk.f32.gmra.mxu3 %vm144_vm0, %v912_v24 }
 0x12a   :  { %v234_v26 = vpop.f32.mrf.mxu2  ;;  %v263_v27 = vpop.f32.mrf.mxu3 }
 0x12b   :  { %v264_v29 = vadd.f32 %v263_v27, %v234_v26 }
 0x12d   :  { %v920_v30 = vadd.f32 %v269_v28, %v264_v29 }
 0x12f   :  { %v923_v31 = vmul.f32 0.70710677, %v920_v30 }
 0x131   :  { %v277_v32 = vmul.f32 %v923_v31, %v923_v31 }
 0x132   :  { %v237_v33 = vpop.f32.mrf.mxu2  ;;  %v266_v34 = vpop.f32.mrf.mxu3 }
 0x133   :  { %v278_v36 = vmin.f32 %v277_v32, 16.0  ;;  %v267_v37 = vadd.f32 %v266_v34, %v237_v33 }
 0x135   :  { %v279_v38 = vmul.f32 2.1237322e-06, %v278_v36  ;;  %v927_v39 = vadd.f32 %v270_v35, %v267_v37  ;;  %v290_v40 = vmul.f32 3.8918573e-05, %v278_v36 }
 0x137   :  { %v280_v41 = vadd.f32 0.00028619796, %v279_v38  ;;  %v930_v42 = vmul.f32 0.70710677, %v927_v39  ;;  %v291_v43 = vadd.f32 0.001143296, %v290_v40 }
 0x139   :  { %v281_v44 = vmul.f32 %v280_v41, %v278_v36  ;;  %v317_v45 = vmul.f32 %v930_v42, %v930_v42  ;;  %v292_v46 = vmul.f32 %v291_v43, %v278_v36 }
 0x13b   :  { %v318_v47 = vmin.f32 %v317_v45, 16.0  ;;  %v293_v48 = vadd.f32 0.014752088, %v292_v46  ;;  %v282_v49 = vadd.f32 0.0036580483, %v281_v44 }
 0x13d   :  { %v319_v50 = vmul.f32 2.1237322e-06, %v318_v47  ;;  %v330_v51 = vmul.f32 3.8918573e-05, %v318_v47  ;;  %v294_v52 = vmul.f32 %v293_v48, %v278_v36  ;;  %v283_v56 = vmul.f32 %v282_v49, %v278_v36 }
 0x13f   :  { %v320_v53 = vadd.f32 0.00028619796, %v319_v50  ;;  %v331_v54 = vadd.f32 0.001143296, %v330_v51  ;;  %v295_v55 = vadd.f32 0.112945676, %v294_v52 }
 0x140   :  { %v284_v63 = vadd.f32 0.05243302, %v283_v56 }
 0x141   :  { %v321_v57 = vmul.f32 %v320_v53, %v318_v47  ;;  %v332_v58 = vmul.f32 %v331_v54, %v318_v47  ;;  %v296_v59 = vmul.f32 %v295_v55, %v278_v36 }
 0x142   :  { %v285_v5 = vmul.f32 %v284_v63, %v278_v36  ;;  %v571_v63 = vld [vmem:[#allocation2] ss:$0 sm:$0xff] }
 0x143   :  { %v333_v60 = vadd.f32 0.014752088, %v332_v58  ;;  %v322_v61 = vadd.f32 0.0036580483, %v321_v57  ;;  %v297_v62 = vadd.f32 0.4994258, %v296_v59 }
 0x144   :  { %v286_v9 = vadd.f32 0.18741608, %v285_v5 }
 0x145   :  { %v334_v0 = vmul.f32 %v333_v60, %v318_v47  ;;  %v298_v1 = vmul.f32 %v297_v62, %v278_v36  ;;  %v323_v3 = vmul.f32 %v322_v61, %v318_v47 }
 0x146   :  { %v287_v14 = vmul.f32 %v286_v9, %v278_v36 }
 0x147   :  { %v335_v2 = vadd.f32 0.112945676, %v334_v0  ;;  %v299_v4 = vadd.f32 1.0, %v298_v1  ;;  %v324_v8 = vadd.f32 0.05243302, %v323_v3 }
 0x148   :  { %v288_v23 = vadd.f32 1.1283791, %v287_v14 }
 0x149   :  { %v336_v6 = vmul.f32 %v335_v2, %v318_v47  ;;  %572 = vrcp.f32 %v299_v4  ;;  %v325_v13 = vmul.f32 %v324_v8, %v318_v47  ;;  %v311_v22 = vand.u32 2147483648, %v299_v4 }
 0x14a   :  { %v309_v27 = vand.u32 2147483647, %v299_v4  ;;  %vm305_vm2 = vweird.f32 %v299_v4  ;;  %v289_v35 = vmul.f32 %v288_v23, %v923_v31  ;;  %v570_v31 = vld [vmem:[%s971_s7] ss:$0 sm:$0xff] }
 0x14b   :  { %v337_v7 = vadd.f32 0.4994258, %v336_v6  ;;  %v326_v19 = vadd.f32 0.18741608, %v325_v13  ;;  %v312_v33 = vor.u32 1.1754944e-38, %v311_v22 }
 0x14c   :  { %vm310_vm4 = vcmp.eq.f32.partialorder %v309_v27, 8.507059e+37 }
 0x14d   :  { %v338_v10 = vmul.f32 %v337_v7, %v318_v47  ;;  %v327_v32 = vmul.f32 %v326_v19, %v318_v47  ;;  %v273_v47 = vmul.f32 0.5, %v920_v30  ;;  %v274_v30 = vmul.f32 0.5, %v927_v39 }
 0x14f   :  { %v339_v11 = vadd.f32 1.0, %v338_v10  ;;  %v573_v12 = vpop.eup %572  ;;  %v328_v43 = vadd.f32 1.1283791, %v327_v32 }
 0x150   :  { %v301_v15 = vmul.f32 %v573_v12, %v299_v4  ;;  %vm306_vm1 = vweird.f32 %v573_v12 }
 0x151   :  { %574 = vrcp.f32 %v339_v11  ;;  %vm307_vm3 = vmor %vm305_vm2, %vm306_vm1  ;;  %v351_v41 = vand.u32 2147483648, %v339_v11  ;;  %v349_v45 = vand.u32 2147483647, %v339_v11  ;;  %vm345_vm6 = vweird.f32 %v339_v11 }
 0x152   :  { %v302_v17 = vsub.f32 1.0, %v301_v15  ;;  %v329_v51 = vmul.f32 %v328_v43, %v930_v42  ;;  %v361_v42 = vld [vmem:[%s971_s7] sm:$0x1]  ;;  %s801_s7 = smov [#allocation15]  }
 0x153   :  { %v352_v50 = vor.u32 1.1754944e-38, %v351_v41  ;;  %vm350_vm8 = vcmp.eq.f32.partialorder %v349_v45, 8.507059e+37  ;;  %s519_s26 = sshll.u32 %s801_s7, 4  ;;  %s520_s26 = int_to_ptr.vmem [resolvable:$true] %s519_s26 }
 0x154   :  { %v303_v26 = vmul.f32 %v573_v12, %v302_v17 }
 0x156   :  { %v304_v29 = vadd.f32 %v573_v12, %v303_v26 }
 0x157   :  { %v575_v28 = vpop.eup %574 }
 0x158   :  { %v341_v34 = vmul.f32 %v575_v28, %v339_v11  ;;  %v308_v36 = vsel %vm307_vm3, %v573_v12, %v304_v29  ;;  %vm346_vm5 = vweird.f32 %v575_v28 }
 0x159   :  { %v313_v37 = vsel %vm310_vm4, %v312_v33, %v308_v36  ;;  %vm347_vm7 = vmor %vm345_vm6, %vm346_vm5  ;;  %vm499_vm6 = vcmask 122880  }
 0x15a   :  { %v342_v38 = vsub.f32 1.0, %v341_v34  ;;  %v314_v40 = vmul.f32 %v313_v37, %v289_v35  ;;  %v449_v37 = vpop.permute.xlu1 %448 }
 0x15c   :  { %v343_v44 = vmul.f32 %v575_v28, %v342_v38  ;;  %v547_v46 = vclamps-f32 %v314_v40, 1.0  ;;  %v451_v38 = vperm.slane %v449_v37, 0 }
 0x15e   :  { %v344_v48 = vadd.f32 %v575_v28, %v343_v44  ;;  %v357_v49 = vadd.f32 1.0, %v547_v46 }
 0x160   :  { %v348_v52 = vsel %vm347_vm7, %v575_v28, %v344_v48  ;;  %v359_v53 = vmul.f32 %v357_v49, %v273_v47 }
 0x161   :  { %v353_v54 = vsel %vm350_vm8, %v352_v50, %v348_v52 }
 0x162   :  { %v354_v55 = vmul.f32 %v353_v54, %v329_v51  ;;  %v366_v56 = vmul.f32 %v570_v31, %v359_v53 }
 0x164   :  { %v548_v57 = vclamps-f32 %v354_v55, 1.0  ;;  %v368_v58 = vsel %vm144_vm0, %v366_v56, 0.0 }
 0x165   :  { %369 = vadd.xlane.f32.xlu0 %v368_v58 }
 0x166   :  { %v358_v59 = vadd.f32 1.0, %v548_v57 }
 0x168   :  { %v360_v60 = vmul.f32 %v358_v59, %v274_v30 }
 0x16a   :  { %551 = vmatpush.xpose.msk.msrb.mxu0 %vm144_vm0, %v360_v60  ;;  %v367_v61 = vmul.f32 %v570_v31, %v360_v60 }
 0x16c   :  { %v371_v62 = vsel %vm144_vm0, %v367_v61, 0.0 }
 0x16d   :  { %372 = vadd.xlane.f32.xlu0 %v371_v62 }
 0x16e   :  { %552 = vmatpush.xpose.msk.msrb.mxu0 %vm144_vm0, %v359_v53 }
 0x171   :  { %553 = vmatmul.msk.f32.vlgmr.msrb.gmra.mxu0 %vm144_vm0, %v361_v42 }
 0x1d8   :  { %v370_v0 = vpop.xlane.xlu0 %369 }
 0x1d9   :  { %v377_v39 = vadd.f32 %v571_v63, %v370_v0 }
 0x1db   :  { %v549_v1 = vmul.f32 -1.442695, %v377_v39 }
 0x1dd   :  { %576 = vpow2.f32 %v549_v1 }
 0x1e0   :  { %v373_v2 = vpop.xlane.xlu0 %372 }
 0x1e1   :  { %v378_v3 = vadd.f32 %v571_v63, %v373_v2 }
 0x1e3   :  { %v577_v4 = vpop.eup %576  ;;  %v550_v5 = vmul.f32 -1.442695, %v378_v3 }
 0x1e4   :  { %v385_v6 = vadd.f32 1.0, %v577_v4 }
 0x1e5   :  { %578 = vpow2.f32 %v550_v5 }
 0x1e6   :  { %580 = vrcp.f32 %v385_v6  ;;  %v398_v12 = vand.u32 2147483648, %v385_v6  ;;  %v396_v14 = vand.u32 2147483647, %v385_v6  ;;  %vm392_vm10 = vweird.f32 %v385_v6 }
 0x1e8   :  { %v399_v17 = vor.u32 1.1754944e-38, %v398_v12  ;;  %vm397_vm12 = vcmp.eq.f32.partialorder %v396_v14, 8.507059e+37 }
 0x1eb   :  { %v579_v7 = vpop.eup %578 }
 0x1ec   :  { %v581_v8 = vpop.eup %580  ;;  %v386_v9 = vadd.f32 1.0, %v579_v7 }
 0x1ed   :  { %v388_v10 = vmul.f32 %v581_v8, %v385_v6  ;;  %vm393_vm9 = vweird.f32 %v581_v8 }
 0x1ee   :  { %582 = vrcp.f32 %v386_v9  ;;  %vm394_vm11 = vmor %vm392_vm10, %vm393_vm9  ;;  %v413_v27 = vand.u32 2147483648, %v386_v9  ;;  %v411_v29 = vand.u32 2147483647, %v386_v9  ;;  %vm407_vm14 = vweird.f32 %v386_v9  ;;  %v477_v40 = vpop.f32.mrf.mxu0 }
 0x1ef   :  { %v389_v11 = vsub.f32 1.0, %v388_v10  ;;  %v478_v41 = vadd.f32 %v477_v40, %v451_v38 }
 0x1f0   :  { %v414_v33 = vor.u32 1.1754944e-38, %v413_v27  ;;  %vm412_vm1 = vcmp.eq.f32.partialorder %v411_v29, 8.507059e+37 }
 0x1f1   :  { %v390_v13 = vmul.f32 %v581_v8, %v389_v11  ;;  %v554_v43 = vmul.f32 -1.442695, %v478_v41 }
 0x1f3   :  { %v391_v15 = vadd.f32 %v581_v8, %v390_v13  ;;  %584 = vpow2.f32 %v554_v43 }
 0x1f4   :  { %v583_v16 = vpop.eup %582 }
 0x1f5   :  { %v395_v18 = vsel %vm394_vm11, %v581_v8, %v391_v15  ;;  %v403_v19 = vmul.f32 %v583_v16, %v386_v9  ;;  %vm408_vm13 = vweird.f32 %v583_v16 }
 0x1f6   :  { %v400_v22 = vsel %vm397_vm12, %v399_v17, %v395_v18  ;;  %vm409_vm15 = vmor %vm407_vm14, %vm408_vm13 }
 0x1f7   :  { %v417_v23 = vsub.f32 1.0, %v400_v22  ;;  %v404_v26 = vsub.f32 1.0, %v403_v19 }
 0x1f9   :  { %421 = vperm.xlu1 %566, %v417_v23   ;;  %v405_v28 = vmul.f32 %v583_v16, %v404_v26  ;;  %v585_v44 = vpop.eup %584 }
 0x1fa   :  { %v483_v45 = vadd.f32 1.0, %v585_v44 }
 0x1fb   :  { %v406_v32 = vadd.f32 %v583_v16, %v405_v28 }
 0x1fc   :  { %586 = vrcp.f32 %v483_v45  ;;  %v495_v31 = vand.u32 2147483648, %v483_v45  ;;  %vm489_vm2 = vweird.f32 %v483_v45  ;;  %v493_v51 = vand.u32 2147483647, %v483_v45 }
 0x1fd   :  { %v410_v34 = vsel %vm409_vm15, %v583_v16, %v406_v32 }
 0x1fe   :  { %v415_v35 = vsel %vm412_vm1, %v414_v33, %v410_v34  ;;  %v496_v52 = vor.u32 1.1754944e-38, %v495_v31  ;;  %vm494_vm5 = vcmp.eq.f32.partialorder %v493_v51, 8.507059e+37 }
 0x1ff   :  { %438 = vperm.xlu0 %568, %v415_v35   ;;  %v418_v36 = vsub.f32 1.0, %v415_v35 }
 0x201   :  { %426 = vperm.xlu2 %567, %v418_v36  }
 0x202   :  { %v587_v46 = vpop.eup %586 }
 0x203   :  { %v485_v48 = vmul.f32 %v587_v46, %v483_v45  ;;  %vm490_vm3 = vweird.f32 %v587_v46 }
 0x204   :  { %vm491_vm4 = vmor %vm489_vm2, %vm490_vm3 }
 0x205   :  { %v486_v47 = vsub.f32 1.0, %v485_v48 }
 0x207   :  { %v487_v49 = vmul.f32 %v587_v46, %v486_v47 }
 0x209   :  { %433 = vperm.xlu2 %567, %v400_v22   ;;  %v488_v50 = vadd.f32 %v587_v46, %v487_v49 }
 0x20b   :  { %v492_v53 = vsel %vm491_vm4, %v587_v46, %v488_v50 }
 0x20c   :  { %v497_v54 = vsel %vm494_vm5, %v496_v52, %v492_v53 }
 0x20d   :  { %500 = vst.msk [vmem:[#allocation15] sm:$0x1] %vm499_vm6, %v497_v54 }
 0x20e   :  { %524 = dma.vmem_to_hbm [thread:$0]  %s520_s26, 16, %s522_s3, [#allocation16]  }
 0x25b   :  { %v427_v55 = vpop.permute.xlu2 %426 }
 0x25c   :  { %v430_v61 = vmul.f32 %v427_v55, %v912_v24 }
 0x263   :  { %v434_v56 = vpop.permute.xlu2 %433 }
 0x264   :  { %v441_v58 = vmul.f32 %v434_v56, %v906_v21 }
 0x26b   :  { %v422_v57 = vpop.permute.xlu1 %421 }
 0x26c   :  { %v429_v30 = vmul.f32 %v422_v57, %v904_v20 }
 0x26e   :  { %v443_v59 = vadd.f32 %v441_v58, %v429_v30 }
 0x270   :  { %445 = vst.msk [vmem:[#allocation14] sm:$0xff] %vm144_vm0, %v443_v59 }
 0x271   :  { %v439_v60 = vpop.permute.xlu0 %438 }
 0x272   :  { %v442_v62 = vmul.f32 %v439_v60, %v914_v25 }
 0x274   :  { %v444_v42 = vadd.f32 %v442_v62, %v430_v61 }
 0x276   :  { %446 = vst.msk [vmem:[#allocation14 + $0x8] sm:$0xff] %vm144_vm0, %v444_v42 }
 0x277   :  { %513 = dma.vmem_to_hbm [thread:$0]  %s506_s28, 256, %s508_s11, [#allocation5], %s793_s8, %s793_s8, %s794_s23  }
 0x278   :  { %788 = dma.done.wait [#allocation5], 256  }
 0x279   :  { %789 = vsyncadd [#allocation5], 4294967040 }
 0x27a   :  { %790 = dma.done.wait [#allocation16], 16  }
 0x27b   :  { %791 = vsyncadd [#allocation16], 4294967280 }
 0x27c   :  { %533 = vsyncpa [#allocation4], 1 }
 0x27d   :  { %534 = vsyncpa [#allocation7], 1 }
 0x27e   :  { %535 = vsyncpa [#allocation10], 1 }
 0x27f   :  { %536 = vsyncpa [#allocation13], 1 }
 0x280   :  { %537 = vsyncpa [#allocation5], 1 }
 0x281   :  { %538 = vsyncpa [#allocation16], 1 }

</bundles_post_ra>
